<compile_context>
chip_gen: v5e
topology: v5e:2x2
jax: 0.10.0
libtpu: 0.0.40
codegen_flags: <defaults>
</compile_context>

<pallas_src>
import functools

import jax
import jax.numpy as jnp
from jax.experimental import pallas as pl
from jax.experimental.pallas import tpu as pltpu


# ----------------------------- Pallas kernel --------------------------------
def mappingnet_kernel(x_ref, w1_ref, b1_ref, wenc_ref, benc_ref, mask_ref,
                      o_ref, *, n_layers, b_blk, seq_len, DIL):
    """Whole batch chunk in one step.

    x_ref    : (N = b_blk*T, K1*Cin)  lane-dense first-conv im2col slab
    w1_ref   : (K1*Cin, D)            first-conv weight
    b1_ref   : (1, D)
    wenc_ref : (L*3, D, D)            per-tap encoder weights (tap-major)
    benc_ref : (L, D)
    mask_ref : (N, 1)                 1/valid_len on valid rows, 0 elsewhere
    o_ref    : (b_blk, D)             pooled descriptors
    """
    N = x_ref.shape[0]
    D = o_ref.shape[-1]

    def shift(v, k):
        # out[i] = v[i + k] (k may be negative).  Wrapped rows only land in
        # positions the pooling mask zeroes and that no later valid row reads
        # (invariant asserted in the wrapper).
        return pltpu.roll(v, shift=(N - k) % N, axis=0)

    # ---- first conv (k=7, valid): ONE lane-dense (N,112)x(112,D) matmul ----
    out = jnp.dot(x_ref[...], w1_ref[...],
                  preferred_element_type=jnp.float32) + b1_ref[...]

    # ---- encoders: LeakyReLU(0.1) -> dilated conv + residual ----
    # Taps centered on the residual frame: {-DIL, 0, +DIL}; split into three
    # accumulating dots so the (idle) MXU does the work instead of XLU concats.
    for i in range(n_layers):
        a = jnp.maximum(out, 0.1 * out)                       # LeakyReLU(0.1)
        z = jnp.dot(shift(a, -DIL), wenc_ref[3 * i + 0],
                    preferred_element_type=jnp.float32)
        z = z + jnp.dot(a, wenc_ref[3 * i + 1],
                        preferred_element_type=jnp.float32)
        z = z + jnp.dot(shift(a, DIL), wenc_ref[3 * i + 2],
                        preferred_element_type=jnp.float32)
        out = out + z + benc_ref[i]                           # residual: row-aligned

    # ---- AdaptiveAvgPool1d(1): masked mean per batch (mask-mul + reduce) ----
    masked = out * mask_ref[...]                              # (N, D)
    o_ref[...] = jnp.sum(masked.reshape(b_blk, seq_len, D), axis=1)


# ----------------------------- wrapper ---------------------------------------
def mappingnet_forward(x_ncl, w1, b1, wenc, benc, *, n_layers):
    """x_ncl: (B, Cin, T) float32 -> (B, D, 1) float32 (matches PyTorch)."""
    B, Cin, T = x_ncl.shape
    K1, _, D = w1.shape
    L, KE, _, _ = wenc.shape
    DIL = 3
    assert L == n_layers and KE == 3
    valid_len = T - (K1 - 1) - n_layers * (KE - 1) * DIL
    assert valid_len >= 1
    assert T % 8 == 0, "T must be a multiple of 8 for aligned sublane blocks"

    # Single grid step: at these sizes the per-step overhead dominates any
    # split on single-TC v5e/v6e, and even v7x's two TCs have too little work
    # to amortize it at B=2.
    n_chunks = 1
    b_blk = pl.cdiv(B, n_chunks)
    b_pad = n_chunks * b_blk
    n_rows = b_blk * T

    x_btc = jnp.transpose(x_ncl, (0, 2, 1)).astype(jnp.float32)   # (B, T, Cin)
    if b_pad > B:
        x_btc = jnp.pad(x_btc, ((0, b_pad - B), (0, 0), (0, 0)))

    # First-conv im2col in XLA: per-batch correct, lane-dense (b_pad*T, 112)
    # slab; zero-padded tail rows land in the masked-out region.
    taps = [jnp.pad(x_btc[:, k:, :], ((0, 0), (0, k), (0, 0))) for k in range(K1)]
    x_flat = jnp.concatenate(taps, axis=-1).reshape(b_pad * T, K1 * Cin)

    w1f = w1.reshape(K1 * Cin, D)                             # (112, D)
    b1f = b1.reshape(1, D)
    wencf = wenc.reshape(L * KE, D, D)                        # (3L, D, D)

    # Valid-window bookkeeping for the centered-tap frames: the window start
    # shifts by DIL per layer; assert the window plus the total tap reach never
    # leaves the first-conv-valid region [0, T-K1] of each batch segment, so no
    # wrapped / cross-batch row can contaminate a pooled row.
    valid_off = n_layers * DIL
    total_reach = n_layers * DIL
    assert valid_off - total_reach >= 0
    assert valid_off + valid_len - 1 + total_reach <= T - K1

    t_idx = jnp.arange(T)
    mask_t = jnp.where((t_idx >= valid_off) & (t_idx < valid_off + valid_len),
                       1.0 / valid_len, 0.0).astype(jnp.float32)
    mask = jnp.tile(mask_t, b_blk)[:, None]                   # (n_rows, 1)

    kernel = functools.partial(mappingnet_kernel, n_layers=n_layers,
                               b_blk=b_blk, seq_len=T, DIL=DIL)

    out = pl.pallas_call(
        kernel,
        out_shape=jax.ShapeDtypeStruct((b_pad, D), jnp.float32),
        grid_spec=pltpu.PrefetchScalarGridSpec(
            num_scalar_prefetch=0,
            grid=(n_chunks,),
            in_specs=[
                pl.BlockSpec((n_rows, K1 * Cin), lambda c: (c, 0)),   # activations
                pl.BlockSpec((K1 * Cin, D), lambda c: (0, 0)),        # VMEM-resident
                pl.BlockSpec((1, D), lambda c: (0, 0)),
                pl.BlockSpec((L * KE, D, D), lambda c: (0, 0, 0)),
                pl.BlockSpec((L, D), lambda c: (0, 0)),
                pl.BlockSpec((n_rows, 1), lambda c: (0, 0)),          # pooling mask
            ],
            out_specs=pl.BlockSpec((b_blk, D), lambda c: (c, 0)),
        ),
        compiler_params=pltpu.CompilerParams(
            dimension_semantics=("arbitrary",)),
    )(x_flat, w1f, b1f, wencf, benc, mask)

    pooled = out[:B]                                          # (B, D)
    return pooled[:, :, None]                                 # (B, D, 1)


# ----------------------------- pure-JAX reference ----------------------------
def mappingnet_ref(x_ncl, w1, b1, wenc, benc, *, n_layers):
    x = jnp.transpose(x_ncl, (0, 2, 1))                       # (B, T, Cin)
    B, T, Cin = x.shape
    K1, _, D = w1.shape
    KE, DIL = 3, 3

    t1 = T - (K1 - 1)
    out = jnp.zeros((B, t1, D), jnp.float32)
    for k in range(K1):
        out = out + jnp.einsum('btc,cd->btd', x[:, k:k + t1, :], w1[k])
    out = out + b1[None]
    cur_len = t1

    for i in range(n_layers):
        a = jnp.where(out > 0, out, 0.1 * out)
        new_len = cur_len - (KE - 1) * DIL
        z = jnp.zeros((B, new_len, D), jnp.float32)
        for k in range(KE):
            off = k * DIL
            z = z + jnp.einsum('btc,cd->btd', a[:, off:off + new_len, :],
                               wenc[i, k])
        z = z + benc[i][None, None, :]
        out = z + out[:, DIL:DIL + new_len, :]
        cur_len = new_len

    pooled = jnp.mean(out, axis=1)                            # (B, D)
    return pooled[:, :, None]                                 # (B, D, 1)


# ----------------------------- main -------------------------------------------
if __name__ == "__main__":
    coeff_nc = 16       # Cin
    descriptor_nc = 32  # D
    n_layers = 3
    B, T = 2, 64        # T must satisfy T - 6 - 6*n_layers >= 1

    key = jax.random.PRNGKey(0)
    k_x, k_w1, k_b1, k_we, k_be = jax.random.split(key, 5)

    x = jax.random.normal(k_x, (B, coeff_nc, T), jnp.float32)

    # deterministic parameters, stored as (K, Cin, Cout) tap matrices
    w1 = 0.1 * jax.random.normal(k_w1, (7, coeff_nc, descriptor_nc), jnp.float32)
    b1 = 0.1 * jax.random.normal(k_b1, (1, descriptor_nc), jnp.float32)
    wenc = 0.1 * jax.random.normal(
        k_we, (n_layers, 3, descriptor_nc, descriptor_nc), jnp.float32)
    benc = 0.1 * jax.random.normal(k_be, (n_layers, descriptor_nc), jnp.float32)

    out = mappingnet_forward(x, w1, b1, wenc, benc, n_layers=n_layers)
    out = jax.block_until_ready(out)

    ref = mappingnet_ref(x, w1, b1, wenc, benc, n_layers=n_layers)
    assert out.shape == (B, descriptor_nc, 1), out.shape
    assert jnp.allclose(out, ref, atol=1e-4, rtol=1e-4), \
        float(jnp.max(jnp.abs(out - ref)))

    print("KERNEL_OK")
</pallas_src>

<mosaic_0001>
module attributes {stable_mosaic.version = 11 : i64} {
  func.func @mappingnet_kernel(%arg0: i32, %arg1: memref<128x112xf32, #tpu.memory_space<vmem>>, %arg2: memref<112x32xf32, #tpu.memory_space<vmem>>, %arg3: memref<1x32xf32, #tpu.memory_space<vmem>>, %arg4: memref<9x32x32xf32, #tpu.memory_space<vmem>>, %arg5: memref<3x32xf32, #tpu.memory_space<vmem>>, %arg6: memref<128x1xf32, #tpu.memory_space<vmem>>, %arg7: memref<2x32xf32, #tpu.memory_space<vmem>>) attributes {dimension_semantics = [#tpu.dimension_semantics<arbitrary>], iteration_bounds = array<i64: 1>, scalar_prefetch = 0 : i64, scratch_operands = 0 : i64, tpu.core_type = #tpu.core_type<tc>, window_params = [{transform_indices = @transform_0, window_bounds = array<i64: 128, 112>}, {pipeline_mode = #tpu.pipeline_mode<synchronous>, transform_indices = @transform_1, window_bounds = array<i64: 112, 32>}, {pipeline_mode = #tpu.pipeline_mode<synchronous>, transform_indices = @transform_2, window_bounds = array<i64: 1, 32>}, {pipeline_mode = #tpu.pipeline_mode<synchronous>, transform_indices = @transform_3, window_bounds = array<i64: 9, 32, 32>}, {pipeline_mode = #tpu.pipeline_mode<synchronous>, transform_indices = @transform_4, window_bounds = array<i64: 3, 32>}, {pipeline_mode = #tpu.pipeline_mode<synchronous>, transform_indices = @transform_5, window_bounds = array<i64: 128, 1>}, {transform_indices = @transform_6, window_bounds = array<i64: 2, 32>}]} {
    %c0 = arith.constant 0 : index
    %c0_0 = arith.constant 0 : index
    %0 = vector.load %arg1[%c0, %c0_0] : memref<128x112xf32, #tpu.memory_space<vmem>>, vector<128x112xf32>
    %c0_1 = arith.constant 0 : index
    %c0_2 = arith.constant 0 : index
    %1 = vector.load %arg2[%c0_1, %c0_2] : memref<112x32xf32, #tpu.memory_space<vmem>>, vector<112x32xf32>
    %cst = arith.constant dense<0.000000e+00> : vector<128x32xf32>
    %2 = tpu.matmul %0, %1, %cst {dimension_numbers = #tpu.dot_dimension_numbers<[1], [0], [0], [1], [0, 0, 1, 1], [], []>} : vector<128x112xf32>, vector<112x32xf32>, vector<128x32xf32> -> vector<128x32xf32>
    %c0_3 = arith.constant 0 : index
    %c0_4 = arith.constant 0 : index
    %3 = vector.load %arg3[%c0_3, %c0_4] : memref<1x32xf32, #tpu.memory_space<vmem>>, vector<1x32xf32>
    %4 = vector.broadcast %3 : vector<1x32xf32> to vector<128x32xf32>
    %5 = arith.addf %2, %4 : vector<128x32xf32>
    %cst_5 = arith.constant 1.000000e-01 : f32
    %6 = vector.broadcast %cst_5 : f32 to vector<128x32xf32>
    %7 = arith.mulf %6, %5 : vector<128x32xf32>
    %8 = arith.maximumf %5, %7 : vector<128x32xf32>
    %c3_i32 = arith.constant 3 : i32
    %9 = tpu.dynamic_rotate %8 by %c3_i32 dim 0 : vector<128x32xf32>, i32 -> vector<128x32xf32>
    %c0_6 = arith.constant 0 : index
    %c0_7 = arith.constant 0 : index
    %c0_8 = arith.constant 0 : index
    %10 = vector.load %arg4[%c0_6, %c0_7, %c0_8] : memref<9x32x32xf32, #tpu.memory_space<vmem>>, vector<1x32x32xf32>
    %11 = vector.shape_cast %10 : vector<1x32x32xf32> to vector<32x32xf32>
    %cst_9 = arith.constant dense<0.000000e+00> : vector<128x32xf32>
    %12 = tpu.matmul %9, %11, %cst_9 {dimension_numbers = #tpu.dot_dimension_numbers<[1], [0], [0], [1], [0, 0, 1, 1], [], []>} : vector<128x32xf32>, vector<32x32xf32>, vector<128x32xf32> -> vector<128x32xf32>
    %c1 = arith.constant 1 : index
    %c0_10 = arith.constant 0 : index
    %c0_11 = arith.constant 0 : index
    %13 = vector.load %arg4[%c1, %c0_10, %c0_11] : memref<9x32x32xf32, #tpu.memory_space<vmem>>, vector<1x32x32xf32>
    %14 = vector.shape_cast %13 : vector<1x32x32xf32> to vector<32x32xf32>
    %cst_12 = arith.constant dense<0.000000e+00> : vector<128x32xf32>
    %15 = tpu.matmul %8, %14, %cst_12 {dimension_numbers = #tpu.dot_dimension_numbers<[1], [0], [0], [1], [0, 0, 1, 1], [], []>} : vector<128x32xf32>, vector<32x32xf32>, vector<128x32xf32> -> vector<128x32xf32>
    %16 = arith.addf %12, %15 : vector<128x32xf32>
    %c125_i32 = arith.constant 125 : i32
    %17 = tpu.dynamic_rotate %8 by %c125_i32 dim 0 : vector<128x32xf32>, i32 -> vector<128x32xf32>
    %c2 = arith.constant 2 : index
    %c0_13 = arith.constant 0 : index
    %c0_14 = arith.constant 0 : index
    %18 = vector.load %arg4[%c2, %c0_13, %c0_14] : memref<9x32x32xf32, #tpu.memory_space<vmem>>, vector<1x32x32xf32>
    %19 = vector.shape_cast %18 : vector<1x32x32xf32> to vector<32x32xf32>
    %cst_15 = arith.constant dense<0.000000e+00> : vector<128x32xf32>
    %20 = tpu.matmul %17, %19, %cst_15 {dimension_numbers = #tpu.dot_dimension_numbers<[1], [0], [0], [1], [0, 0, 1, 1], [], []>} : vector<128x32xf32>, vector<32x32xf32>, vector<128x32xf32> -> vector<128x32xf32>
    %21 = arith.addf %16, %20 : vector<128x32xf32>
    %22 = arith.addf %5, %21 : vector<128x32xf32>
    %c0_16 = arith.constant 0 : index
    %c0_17 = arith.constant 0 : index
    %23 = vector.load %arg5[%c0_16, %c0_17] : memref<3x32xf32, #tpu.memory_space<vmem>>, vector<1x32xf32>
    %24 = vector.shape_cast %23 : vector<1x32xf32> to vector<32xf32>
    %25 = vector.shape_cast %24 : vector<32xf32> to vector<1x32xf32>
    %26 = vector.broadcast %25 : vector<1x32xf32> to vector<128x32xf32>
    %27 = arith.addf %22, %26 : vector<128x32xf32>
    %cst_18 = arith.constant 1.000000e-01 : f32
    %28 = vector.broadcast %cst_18 : f32 to vector<128x32xf32>
    %29 = arith.mulf %28, %27 : vector<128x32xf32>
    %30 = arith.maximumf %27, %29 : vector<128x32xf32>
    %c3_i32_19 = arith.constant 3 : i32
    %31 = tpu.dynamic_rotate %30 by %c3_i32_19 dim 0 : vector<128x32xf32>, i32 -> vector<128x32xf32>
    %c3 = arith.constant 3 : index
    %c0_20 = arith.constant 0 : index
    %c0_21 = arith.constant 0 : index
    %32 = vector.load %arg4[%c3, %c0_20, %c0_21] : memref<9x32x32xf32, #tpu.memory_space<vmem>>, vector<1x32x32xf32>
    %33 = vector.shape_cast %32 : vector<1x32x32xf32> to vector<32x32xf32>
    %cst_22 = arith.constant dense<0.000000e+00> : vector<128x32xf32>
    %34 = tpu.matmul %31, %33, %cst_22 {dimension_numbers = #tpu.dot_dimension_numbers<[1], [0], [0], [1], [0, 0, 1, 1], [], []>} : vector<128x32xf32>, vector<32x32xf32>, vector<128x32xf32> -> vector<128x32xf32>
    %c4 = arith.constant 4 : index
    %c0_23 = arith.constant 0 : index
    %c0_24 = arith.constant 0 : index
    %35 = vector.load %arg4[%c4, %c0_23, %c0_24] : memref<9x32x32xf32, #tpu.memory_space<vmem>>, vector<1x32x32xf32>
    %36 = vector.shape_cast %35 : vector<1x32x32xf32> to vector<32x32xf32>
    %cst_25 = arith.constant dense<0.000000e+00> : vector<128x32xf32>
    %37 = tpu.matmul %30, %36, %cst_25 {dimension_numbers = #tpu.dot_dimension_numbers<[1], [0], [0], [1], [0, 0, 1, 1], [], []>} : vector<128x32xf32>, vector<32x32xf32>, vector<128x32xf32> -> vector<128x32xf32>
    %38 = arith.addf %34, %37 : vector<128x32xf32>
    %c125_i32_26 = arith.constant 125 : i32
    %39 = tpu.dynamic_rotate %30 by %c125_i32_26 dim 0 : vector<128x32xf32>, i32 -> vector<128x32xf32>
    %c5 = arith.constant 5 : index
    %c0_27 = arith.constant 0 : index
    %c0_28 = arith.constant 0 : index
    %40 = vector.load %arg4[%c5, %c0_27, %c0_28] : memref<9x32x32xf32, #tpu.memory_space<vmem>>, vector<1x32x32xf32>
    %41 = vector.shape_cast %40 : vector<1x32x32xf32> to vector<32x32xf32>
    %cst_29 = arith.constant dense<0.000000e+00> : vector<128x32xf32>
    %42 = tpu.matmul %39, %41, %cst_29 {dimension_numbers = #tpu.dot_dimension_numbers<[1], [0], [0], [1], [0, 0, 1, 1], [], []>} : vector<128x32xf32>, vector<32x32xf32>, vector<128x32xf32> -> vector<128x32xf32>
    %43 = arith.addf %38, %42 : vector<128x32xf32>
    %44 = arith.addf %27, %43 : vector<128x32xf32>
    %c1_30 = arith.constant 1 : index
    %c0_31 = arith.constant 0 : index
    %45 = vector.load %arg5[%c1_30, %c0_31] : memref<3x32xf32, #tpu.memory_space<vmem>>, vector<1x32xf32>
    %46 = vector.shape_cast %45 : vector<1x32xf32> to vector<32xf32>
    %47 = vector.shape_cast %46 : vector<32xf32> to vector<1x32xf32>
    %48 = vector.broadcast %47 : vector<1x32xf32> to vector<128x32xf32>
    %49 = arith.addf %44, %48 : vector<128x32xf32>
    %cst_32 = arith.constant 1.000000e-01 : f32
    %50 = vector.broadcast %cst_32 : f32 to vector<128x32xf32>
    %51 = arith.mulf %50, %49 : vector<128x32xf32>
    %52 = arith.maximumf %49, %51 : vector<128x32xf32>
    %c3_i32_33 = arith.constant 3 : i32
    %53 = tpu.dynamic_rotate %52 by %c3_i32_33 dim 0 : vector<128x32xf32>, i32 -> vector<128x32xf32>
    %c6 = arith.constant 6 : index
    %c0_34 = arith.constant 0 : index
    %c0_35 = arith.constant 0 : index
    %54 = vector.load %arg4[%c6, %c0_34, %c0_35] : memref<9x32x32xf32, #tpu.memory_space<vmem>>, vector<1x32x32xf32>
    %55 = vector.shape_cast %54 : vector<1x32x32xf32> to vector<32x32xf32>
    %cst_36 = arith.constant dense<0.000000e+00> : vector<128x32xf32>
    %56 = tpu.matmul %53, %55, %cst_36 {dimension_numbers = #tpu.dot_dimension_numbers<[1], [0], [0], [1], [0, 0, 1, 1], [], []>} : vector<128x32xf32>, vector<32x32xf32>, vector<128x32xf32> -> vector<128x32xf32>
    %c7 = arith.constant 7 : index
    %c0_37 = arith.constant 0 : index
    %c0_38 = arith.constant 0 : index
    %57 = vector.load %arg4[%c7, %c0_37, %c0_38] : memref<9x32x32xf32, #tpu.memory_space<vmem>>, vector<1x32x32xf32>
    %58 = vector.shape_cast %57 : vector<1x32x32xf32> to vector<32x32xf32>
    %cst_39 = arith.constant dense<0.000000e+00> : vector<128x32xf32>
    %59 = tpu.matmul %52, %58, %cst_39 {dimension_numbers = #tpu.dot_dimension_numbers<[1], [0], [0], [1], [0, 0, 1, 1], [], []>} : vector<128x32xf32>, vector<32x32xf32>, vector<128x32xf32> -> vector<128x32xf32>
    %60 = arith.addf %56, %59 : vector<128x32xf32>
    %c125_i32_40 = arith.constant 125 : i32
    %61 = tpu.dynamic_rotate %52 by %c125_i32_40 dim 0 : vector<128x32xf32>, i32 -> vector<128x32xf32>
    %c8 = arith.constant 8 : index
    %c0_41 = arith.constant 0 : index
    %c0_42 = arith.constant 0 : index
    %62 = vector.load %arg4[%c8, %c0_41, %c0_42] : memref<9x32x32xf32, #tpu.memory_space<vmem>>, vector<1x32x32xf32>
    %63 = vector.shape_cast %62 : vector<1x32x32xf32> to vector<32x32xf32>
    %cst_43 = arith.constant dense<0.000000e+00> : vector<128x32xf32>
    %64 = tpu.matmul %61, %63, %cst_43 {dimension_numbers = #tpu.dot_dimension_numbers<[1], [0], [0], [1], [0, 0, 1, 1], [], []>} : vector<128x32xf32>, vector<32x32xf32>, vector<128x32xf32> -> vector<128x32xf32>
    %65 = arith.addf %60, %64 : vector<128x32xf32>
    %66 = arith.addf %49, %65 : vector<128x32xf32>
    %c2_44 = arith.constant 2 : index
    %c0_45 = arith.constant 0 : index
    %67 = vector.load %arg5[%c2_44, %c0_45] : memref<3x32xf32, #tpu.memory_space<vmem>>, vector<1x32xf32>
    %68 = vector.shape_cast %67 : vector<1x32xf32> to vector<32xf32>
    %69 = vector.shape_cast %68 : vector<32xf32> to vector<1x32xf32>
    %70 = vector.broadcast %69 : vector<1x32xf32> to vector<128x32xf32>
    %71 = arith.addf %66, %70 : vector<128x32xf32>
    %c0_46 = arith.constant 0 : index
    %c0_47 = arith.constant 0 : index
    %72 = vector.load %arg6[%c0_46, %c0_47] : memref<128x1xf32, #tpu.memory_space<vmem>>, vector<128x1xf32>
    %73 = vector.broadcast %72 : vector<128x1xf32> to vector<128x32xf32>
    %74 = arith.mulf %71, %73 : vector<128x32xf32>
    %75 = vector.shape_cast %74 : vector<128x32xf32> to vector<2x64x32xf32>
    %cst_48 = arith.constant dense<0.000000e+00> : vector<2x32xf32>
    %76 = vector.multi_reduction <add>, %75, %cst_48 [1] : vector<2x64x32xf32> to vector<2x32xf32>
    %c0_49 = arith.constant 0 : index
    %c0_50 = arith.constant 0 : index
    %77 = vector.load %arg7[%c0_49, %c0_50] : memref<2x32xf32, #tpu.memory_space<vmem>>, vector<2x32xf32>
    tpu.vector_store %arg7[%c0_49, %c0_50], %76 {strides = array<i32>} : memref<2x32xf32, #tpu.memory_space<vmem>>, vector<2x32xf32>,
    return
  }
  func.func @transform_0(%arg0: i32) -> (i32, i32) {
    %c0_i32 = arith.constant 0 : i32
    %c0_i32_0 = arith.constant 0 : i32
    return %arg0, %c0_i32 : i32, i32
  }
  func.func @transform_1(%arg0: i32) -> (i32, i32) {
    %c0_i32 = arith.constant 0 : i32
    %c0_i32_0 = arith.constant 0 : i32
    %c0_i32_1 = arith.constant 0 : i32
    return %c0_i32, %c0_i32_0 : i32, i32
  }
  func.func @transform_2(%arg0: i32) -> (i32, i32) {
    %c0_i32 = arith.constant 0 : i32
    %c0_i32_0 = arith.constant 0 : i32
    %c0_i32_1 = arith.constant 0 : i32
    return %c0_i32, %c0_i32_0 : i32, i32
  }
  func.func @transform_3(%arg0: i32) -> (i32, i32, i32) {
    %c0_i32 = arith.constant 0 : i32
    %c0_i32_0 = arith.constant 0 : i32
    %c0_i32_1 = arith.constant 0 : i32
    %c0_i32_2 = arith.constant 0 : i32
    return %c0_i32, %c0_i32_0, %c0_i32_1 : i32, i32, i32
  }
  func.func @transform_4(%arg0: i32) -> (i32, i32) {
    %c0_i32 = arith.constant 0 : i32
    %c0_i32_0 = arith.constant 0 : i32
    %c0_i32_1 = arith.constant 0 : i32
    return %c0_i32, %c0_i32_0 : i32, i32
  }
  func.func @transform_5(%arg0: i32) -> (i32, i32) {
    %c0_i32 = arith.constant 0 : i32
    %c0_i32_0 = arith.constant 0 : i32
    %c0_i32_1 = arith.constant 0 : i32
    return %c0_i32, %c0_i32_0 : i32, i32
  }
  func.func @transform_6(%arg0: i32) -> (i32, i32) {
    %c0_i32 = arith.constant 0 : i32
    %c0_i32_0 = arith.constant 0 : i32
    return %arg0, %c0_i32 : i32, i32
  }
}

</mosaic_0001>

<bundles_post_ra>
// kernel: tpu_custom_call.1
= control target key start
LH: loop header
LB: loop body
LE: loop exit
PB: predicated region body
PF: predicated region fallthrough
CT: control target
= control target key end

     0   :  { %s3274_s0 = inlined_call_operand.vmem [shape: f32[128,112], index: 0, kind: input, shape index: {}]   ;;  %s3275_s1 = inlined_call_operand.vmem [shape: f32[112,32], index: 1, kind: input, shape index: {}]   ;;  %s3276_s2 = inlined_call_operand.vmem [shape: f32[1,32], index: 2, kind: input, shape index: {}]   ;;  %s3277_s3 = inlined_call_operand.vmem [shape: f32[9,32,32], index: 3, kind: input, shape index: {}]   ;;  %s3278_s4 = inlined_call_operand.vmem [shape: f32[3,32], index: 4, kind: input, shape index: {}]   ;;  %s3279_s5 = inlined_call_operand.vmem [shape: f32[128,1], index: 5, kind: input, shape index: {}]   ;;  %s3280_s6 = inlined_call_operand.hbm [shape: f32[2,32], index: 6, kind: output, shape index: {}]  }
   0x1   :  { %v53_v0 = vld [vmem:[%s3275_s1 + $0x68] sm:$0xff]  ;;  %v52_v1 = vld [vmem:[%s3275_s1 + $0x60] sm:$0xff]  ;;  %v51_v2 = vld [vmem:[%s3275_s1 + $0x58] sm:$0xff] }
   0x2   :  { %109 = vmatpush.msra.mxu0 %v53_v0  ;;  %v50_v3 = vld [vmem:[%s3275_s1 + $0x50] sm:$0xff]  ;;  %v49_v4 = vld [vmem:[%s3275_s1 + $0x48] sm:$0xff] }
   0x4   :  { %110 = vmatpush.msra.mxu0 %v52_v1 }
   0x6   :  { %111 = vmatpush.msra.mxu0 %v51_v2 }
   0x8   :  { %112 = vmatpush.msra.mxu0 %v50_v3 }
   0x9   :  { %11 = vsyncpa [#allocation3], 0  ;;  %v48_v5 = vld [vmem:[%s3275_s1 + $0x40] sm:$0xff]  ;;  %v47_v6 = vld [vmem:[%s3275_s1 + $0x38] sm:$0xff]  ;;  %vm58_vm0 = vcmask 916480   ;;  %vm248_vm1 = vcmask 261120   ;;  %v220_v39 = vlaneseq }
   0xa   :  { %113 = vmatpush.msra.mxu0 %v49_v4  ;;  %v46_v7 = vld [vmem:[%s3275_s1 + $0x30] sm:$0xff]  ;;  %v45_v8 = vld [vmem:[%s3275_s1 + $0x28] sm:$0xff]  ;;  %v44_v9 = vld [vmem:[%s3275_s1 + $0x20] sm:$0xff]  ;;  %s1844_s11 = sshll.u32 %s3280_s6, 4  ;;  %vm1832_vm4 = vcmask 1041409   ;;  %vm1835_vm5 = vcmask 254976   ;;  %s1845_s11 = int_to_ptr.hbm [resolvable:$true] %s1844_s11 }
   0xb   :  { %v43_v10 = vld [vmem:[%s3275_s1 + $0x18] sm:$0xff]  ;;  %v42_v11 = vld [vmem:[%s3275_s1 + $0x10] sm:$0xff]  ;;  %v41_v12 = vld [vmem:[%s3275_s1 + $0x8] sm:$0xff]  ;;  %v2260_v42 = vshrl.u32 %v220_v39, 7 }
   0xc   :  { %114 = vmatpush.msra.mxu0 %v48_v5  ;;  %v40_v13 = vld [vmem:[%s3275_s1] sm:$0xff]  ;;  %v25_v15 = vld [vmem:[%s3274_s0 + $0x8] sm:$0xff]  ;;  %v26_v16 = vld [vmem:[%s3274_s0 + $0x10] sm:$0xff] }
   0xd   :  { %v24_v14 = vld [vmem:[%s3274_s0] sm:$0xff]  ;;  %v27_v17 = vld [vmem:[%s3274_s0 + $0x18] sm:$0xff]  ;;  %v29_v19 = vld [vmem:[%s3274_s0 + $0x28] sm:$0xff]  ;;  %vm222_vm2 = vcmp.lt.s32.totalorder %v2260_v42, 3  ;;  %vm491_vm3 = vcmp.lt.s32.totalorder %v2260_v42, 5 }
   0xe   :  { %115 = vmatpush.msra.mxu0 %v47_v6  ;;  %v28_v18 = vld [vmem:[%s3274_s0 + $0x20] sm:$0xff]  ;;  %v30_v20 = vld [vmem:[%s3274_s0 + $0x30] sm:$0xff]  ;;  %v31_v21 = vld [vmem:[%s3274_s0 + $0x38] sm:$0xff] }
   0xf   :  { %v32_v22 = vld [vmem:[%s3274_s0 + $0x40] sm:$0xff]  ;;  %v33_v23 = vld [vmem:[%s3274_s0 + $0x48] sm:$0xff]  ;;  %v34_v24 = vld [vmem:[%s3274_s0 + $0x50] sm:$0xff] }
  0x10   :  { %116 = vmatpush.msra.mxu0 %v46_v7  ;;  %v35_v25 = vld [vmem:[%s3274_s0 + $0x58] sm:$0xff]  ;;  %v36_v27 = vld [vmem:[%s3274_s0 + $0x60] sm:$0xff]  ;;  %v1871_v28 = vld [vmem:[%s3277_s3 + $0x30] sm:$0xff] }
  0x11   :  { %v1872_v26 = vld [vmem:[%s3277_s3 + $0x38] sm:$0xff]  ;;  %v1870_v29 = vld [vmem:[%s3277_s3 + $0x28] sm:$0xff]  ;;  %v1869_v30 = vld [vmem:[%s3277_s3 + $0x20] sm:$0xff] }
  0x12   :  { %117 = vmatpush.msra.mxu0 %v45_v8  ;;  %309 = vmatpush.msra.mxu1 %v1872_v26  ;;  %v37_v31 = vld [vmem:[%s3274_s0 + $0x68] sm:$0xff]  ;;  %v38_v32 = vld [vmem:[%s3274_s0 + $0x70] sm:$0xff]  ;;  %v39_v33 = vld [vmem:[%s3274_s0 + $0x78] sm:$0xff] }
  0x13   :  { %2045 = vmatpush.msra.mxu3 %v1872_v26  ;;  %v2246_v34 = vld [vmem:[%s3276_s2] ss:$0 sm:$0xff]  ;;  %v242_v57 = vld [vmem:[%s3277_s3 + $0x18] sm:$0xff]  ;;  %v241_v58 = vld [vmem:[%s3277_s3 + $0x10] sm:$0xff] }
  0x14   :  { %118 = vmatpush.msra.mxu0 %v44_v9  ;;  %310 = vmatpush.msra.mxu1 %v1871_v28  ;;  %v240_v63 = vld [vmem:[%s3277_s3 + $0x8] sm:$0xff]  ;;  %v239_v3 = vld [vmem:[%s3277_s3] sm:$0xff] }
  0x15   :  { %2046 = vmatpush.msra.mxu3 %v1871_v28  ;;  %2049 = vmatpush.msra.mxu2 %v242_v57  ;;  %v1685_v42 = vld [vmem:[%s3279_s5 + $0x48] sm:$0xff] }
  0x16   :  { %119 = vmatpush.msra.mxu0 %v43_v10  ;;  %311 = vmatpush.msra.mxu1 %v1870_v29 }
  0x17   :  { %2047 = vmatpush.msra.mxu3 %v1870_v29  ;;  %2050 = vmatpush.msra.mxu2 %v241_v58 }
  0x18   :  { %120 = vmatpush.msra.mxu0 %v42_v11  ;;  %312 = vmatpush.msra.mxu1 %v1869_v30 }
  0x19   :  { %2048 = vmatpush.msra.mxu3 %v1869_v30  ;;  %2051 = vmatpush.msra.mxu2 %v240_v63 }
  0x1a   :  { %121 = vmatpush.msra.mxu0 %v41_v12 }
  0x1b   :  { %2052 = vmatpush.msra.mxu2 %v239_v3 }
  0x1c   :  { %122 = vmatpush.msra.mxu0 %v40_v13 }
  0x1d   :  { %1853 = vmatmul.msk.f32.vlgmr.msra.gmra.mxu0 %vm58_vm0, %v24_v14 }
  0x1e   :  { %422 = vmatpush.msrb.mxu0 %v242_v57 }
  0x20   :  { %423 = vmatpush.msrb.mxu0 %v241_v58 }
  0x22   :  { %424 = vmatpush.msrb.mxu0 %v240_v63 }
  0x24   :  { %425 = vmatpush.msrb.mxu0 %v239_v3 }
  0x25   :  { %1854 = vmatmul.msk.f32.gmra.mxu0 %vm58_vm0, %v25_v15 }
  0x2d   :  { %1855 = vmatmul.msk.f32.gmra.mxu0 %vm58_vm0, %v26_v16 }
  0x35   :  { %1856 = vmatmul.msk.f32.gmra.mxu0 %vm58_vm0, %v27_v17  ;;  %v1908_v17 = vld [vmem:[%s3277_s3 + $0x58] sm:$0xff] }
  0x36   :  { %573 = vmatpush.msrb.mxu3 %v1908_v17 }
  0x3d   :  { %1857 = vmatmul.msk.f32.gmra.mxu0 %vm58_vm0, %v28_v18 }
  0x45   :  { %1858 = vmatmul.msk.f32.gmra.mxu0 %vm58_vm0, %v29_v19 }
  0x4d   :  { %1859 = vmatmul.msk.f32.gmra.mxu0 %vm58_vm0, %v30_v20 }
  0x55   :  { %1860 = vmatmul.msk.f32.gmra.mxu0 %vm58_vm0, %v31_v21 }
  0x5d   :  { %1861 = vmatmul.msk.f32.gmra.mxu0 %vm58_vm0, %v32_v22 }
  0x65   :  { %1862 = vmatmul.msk.f32.gmra.mxu0 %vm58_vm0, %v33_v23 }
  0x6d   :  { %1863 = vmatmul.msk.f32.gmra.mxu0 %vm58_vm0, %v34_v24 }
  0x75   :  { %1864 = vmatmul.msk.f32.gmra.mxu0 %vm58_vm0, %v35_v25 }
  0x7d   :  { %1865 = vmatmul.msk.f32.gmra.mxu0 %vm58_vm0, %v36_v27 }
  0x85   :  { %1866 = vmatmul.msk.f32.gmra.mxu0 %vm58_vm0, %v37_v31 }
  0x8d   :  { %1867 = vmatmul.msk.f32.gmra.mxu0 %vm58_vm0, %v38_v32  ;;  %v1907_v32 = vld [vmem:[%s3277_s3 + $0x50] sm:$0xff] }
  0x8e   :  { %574 = vmatpush.msrb.mxu3 %v1907_v32 }
  0x95   :  { %1868 = vmatmul.msk.f32.gmra.mxu0 %vm58_vm0, %v39_v33 }
  0x9a   :  { %v124_v35 = vpop.f32.mrf.mxu0 }
  0x9b   :  { %v2249_v36 = vadd.f32 %v2246_v34, %v124_v35 }
  0x9d   :  { %v172_v37 = vmul.f32 0.1, %v2249_v36 }
  0x9f   :  { %v2253_v38 = vmax.f32 %v2249_v36, %v172_v37 }
  0xa1   :  { %1873 = vmatmul.msk.f32.vlgmr.msra.gmra.mxu1 %vm248_vm1, %v2253_v38  ;;  %v204_v45 = vrot.slane %v2253_v38, 5 }
  0xa2   :  { %v127_v40 = vpop.f32.mrf.mxu0 }
  0xa3   :  { %v2258_v41 = vadd.f32 %v2246_v34, %v127_v40 }
  0xa5   :  { %v173_v43 = vmul.f32 0.1, %v2258_v41 }
  0xa7   :  { %v2264_v44 = vmax.f32 %v2258_v41, %v173_v43 }
  0xa9   :  { %1874 = vmatmul.msk.f32.gmra.mxu1 %vm248_vm1, %v2264_v44  ;;  %v205_v46 = vrot.slane %v2264_v44, 5  ;;  %v476_v52 = vrot.slane %v2264_v44, 3 }
  0xaa   :  { %v130_v47 = vpop.f32.mrf.mxu0 }
  0xab   :  { %v2272_v48 = vadd.f32 %v2246_v34, %v130_v47  ;;  %v2278_v49 = vsel %vm222_vm2, %v204_v45, %v205_v46 }
  0xad   :  { %v174_v50 = vmul.f32 0.1, %v2272_v48 }
  0xaf   :  { %v190_v51 = vmax.f32 %v2272_v48, %v174_v50 }
  0xb1   :  { %1875 = vmatmul.msk.f32.gmra.mxu1 %vm248_vm1, %v190_v51  ;;  %v477_v53 = vrot.slane %v190_v51, 3  ;;  %v206_v54 = vrot.slane %v190_v51, 5 }
  0xb2   :  { %v133_v55 = vpop.f32.mrf.mxu0 }
  0xb3   :  { %v2286_v56 = vadd.f32 %v2246_v34, %v133_v55  ;;  %v2298_v59 = vsel %vm491_vm3, %v476_v52, %v477_v53  ;;  %v2302_v60 = vsel %vm222_vm2, %v205_v46, %v206_v54 }
  0xb5   :  { %v175_v61 = vmul.f32 0.1, %v2286_v56 }
  0xb7   :  { %v191_v62 = vmax.f32 %v2286_v56, %v175_v61 }
  0xb9   :  { %1876 = vmatmul.msk.f32.gmra.mxu1 %vm248_vm1, %v191_v62  ;;  %v478_v0 = vrot.slane %v191_v62, 3  ;;  %v207_v1 = vrot.slane %v191_v62, 5  ;;  %v1906_v62 = vld [vmem:[%s3277_s3 + $0x48] sm:$0xff] }
  0xba   :  { %v136_v2 = vpop.f32.mrf.mxu0  ;;  %575 = vmatpush.msrb.mxu3 %v1906_v62 }
  0xbb   :  { %v2314_v4 = vadd.f32 %v2246_v34, %v136_v2  ;;  %v2318_v5 = vsel %vm491_vm3, %v477_v53, %v478_v0  ;;  %v2322_v6 = vsel %vm222_vm2, %v206_v54, %v207_v1 }
  0xbd   :  { %v176_v7 = vmul.f32 0.1, %v2314_v4 }
  0xbf   :  { %v192_v8 = vmax.f32 %v2314_v4, %v176_v7 }
  0xc1   :  { %1877 = vmatmul.msk.f32.gmra.mxu1 %vm248_vm1, %v192_v8  ;;  %v479_v9 = vrot.slane %v192_v8, 3  ;;  %v208_v10 = vrot.slane %v192_v8, 5 }
  0xc2   :  { %v139_v11 = vpop.f32.mrf.mxu0 }
  0xc3   :  { %v2328_v12 = vadd.f32 %v2246_v34, %v139_v11  ;;  %v2332_v13 = vsel %vm491_vm3, %v478_v0, %v479_v9  ;;  %v2336_v14 = vsel %vm222_vm2, %v207_v1, %v208_v10 }
  0xc5   :  { %v177_v15 = vmul.f32 0.1, %v2328_v12 }
  0xc7   :  { %v193_v16 = vmax.f32 %v2328_v12, %v177_v15 }
  0xc9   :  { %1878 = vmatmul.msk.f32.gmra.mxu1 %vm248_vm1, %v193_v16  ;;  %v480_v18 = vrot.slane %v193_v16, 3  ;;  %v209_v19 = vrot.slane %v193_v16, 5 }
  0xca   :  { %v142_v20 = vpop.f32.mrf.mxu0 }
  0xcb   :  { %v2345_v21 = vadd.f32 %v2246_v34, %v142_v20  ;;  %v2349_v22 = vsel %vm491_vm3, %v479_v9, %v480_v18  ;;  %v2353_v23 = vsel %vm222_vm2, %v208_v10, %v209_v19 }
  0xcd   :  { %v178_v24 = vmul.f32 0.1, %v2345_v21 }
  0xcf   :  { %v194_v25 = vmax.f32 %v2345_v21, %v178_v24 }
  0xd1   :  { %1879 = vmatmul.msk.f32.gmra.mxu1 %vm248_vm1, %v194_v25  ;;  %v210_v26 = vrot.slane %v194_v25, 5  ;;  %v481_v27 = vrot.slane %v194_v25, 3  ;;  %v1905_v25 = vld [vmem:[%s3277_s3 + $0x40] sm:$0xff] }
  0xd2   :  { %v145_v28 = vpop.f32.mrf.mxu0  ;;  %576 = vmatpush.msrb.mxu3 %v1905_v25 }
  0xd3   :  { %v2359_v29 = vadd.f32 %v2246_v34, %v145_v28  ;;  %v2363_v30 = vsel %vm491_vm3, %v480_v18, %v481_v27  ;;  %v2367_v31 = vsel %vm222_vm2, %v209_v19, %v210_v26 }
  0xd5   :  { %v179_v33 = vmul.f32 0.1, %v2359_v29 }
  0xd7   :  { %v195_v35 = vmax.f32 %v2359_v29, %v179_v33 }
  0xd9   :  { %1880 = vmatmul.msk.f32.gmra.mxu1 %vm248_vm1, %v195_v35  ;;  %v211_v37 = vrot.slane %v195_v35, 5  ;;  %v482_v39 = vrot.slane %v195_v35, 3 }
  0xda   :  { %v148_v40 = vpop.f32.mrf.mxu0 }
  0xdb   :  { %v2376_v43 = vadd.f32 %v2246_v34, %v148_v40  ;;  %v231_v46 = vsel %vm222_vm2, %v210_v26, %v211_v37  ;;  %v2382_v47 = vsel %vm491_vm3, %v481_v27, %v482_v39 }
  0xdc   :  { %1896 = vmatmul.msk.f32.vlgmr.msra.gmra.mxu2 %vm248_vm1, %v231_v46 }
  0xdd   :  { %v180_v50 = vmul.f32 0.1, %v2376_v43 }
  0xdf   :  { %v196_v51 = vmax.f32 %v2376_v43, %v180_v50 }
  0xe1   :  { %1881 = vmatmul.msk.f32.gmra.mxu1 %vm248_vm1, %v196_v51  ;;  %v212_v53 = vrot.slane %v196_v51, 5  ;;  %v483_v54 = vrot.slane %v196_v51, 3 }
  0xe2   :  { %v151_v55 = vpop.f32.mrf.mxu0 }
  0xe3   :  { %v2389_v57 = vadd.f32 %v2246_v34, %v151_v55  ;;  %v230_v58 = vsel %vm222_vm2, %v211_v37, %v212_v53  ;;  %v2395_v61 = vsel %vm491_vm3, %v482_v39, %v483_v54 }
  0xe4   :  { %1897 = vmatmul.msk.f32.gmra.mxu2 %vm248_vm1, %v230_v58 }
  0xe5   :  { %v181_v63 = vmul.f32 0.1, %v2389_v57 }
  0xe7   :  { %v197_v0 = vmax.f32 %v2389_v57, %v181_v63 }
  0xe9   :  { %1882 = vmatmul.msk.f32.vlgmr.msra.gmra.mxu3 %vm248_vm1, %v197_v0  ;;  %v213_v1 = vrot.slane %v197_v0, 5  ;;  %v484_v2 = vrot.slane %v197_v0, 3 }
  0xea   :  { %v154_v3 = vpop.f32.mrf.mxu0 }
  0xeb   :  { %v2405_v7 = vadd.f32 %v2246_v34, %v154_v3  ;;  %v229_v8 = vsel %vm222_vm2, %v212_v53, %v213_v1  ;;  %v2411_v9 = vsel %vm491_vm3, %v483_v54, %v484_v2 }
  0xec   :  { %1898 = vmatmul.msk.f32.gmra.mxu2 %vm248_vm1, %v229_v8 }
  0xed   :  { %v182_v10 = vmul.f32 0.1, %v2405_v7 }
  0xef   :  { %v198_v11 = vmax.f32 %v2405_v7, %v182_v10 }
  0xf1   :  { %1883 = vmatmul.msk.f32.gmra.mxu3 %vm248_vm1, %v198_v11  ;;  %v214_v15 = vrot.slane %v198_v11, 5  ;;  %v485_v16 = vrot.slane %v198_v11, 3 }
  0xf2   :  { %v157_v17 = vpop.f32.mrf.mxu0 }
  0xf3   :  { %v2418_v18 = vadd.f32 %v2246_v34, %v157_v17  ;;  %v228_v19 = vsel %vm222_vm2, %v213_v1, %v214_v15  ;;  %v2424_v20 = vsel %vm491_vm3, %v484_v2, %v485_v16 }
  0xf4   :  { %1899 = vmatmul.msk.f32.gmra.mxu2 %vm248_vm1, %v228_v19 }
  0xf5   :  { %v183_v24 = vmul.f32 0.1, %v2418_v18 }
  0xf7   :  { %v199_v26 = vmax.f32 %v2418_v18, %v183_v24 }
  0xf9   :  { %1884 = vmatmul.msk.f32.gmra.mxu3 %vm248_vm1, %v199_v26  ;;  %v215_v27 = vrot.slane %v199_v26, 5  ;;  %v486_v28 = vrot.slane %v199_v26, 3 }
  0xfa   :  { %v160_v32 = vpop.f32.mrf.mxu0 }
  0xfb   :  { %v2434_v33 = vadd.f32 %v2246_v34, %v160_v32  ;;  %v227_v35 = vsel %vm222_vm2, %v214_v15, %v215_v27  ;;  %v496_v37 = vsel %vm491_vm3, %v485_v16, %v486_v28 }
  0xfc   :  { %1900 = vmatmul.msk.f32.gmra.mxu2 %vm248_vm1, %v227_v35 }
  0xfd   :  { %v184_v39 = vmul.f32 0.1, %v2434_v33 }
  0xff   :  { %v200_v40 = vmax.f32 %v2434_v33, %v184_v39 }
 0x101   :  { %1885 = vmatmul.msk.f32.gmra.mxu3 %vm248_vm1, %v200_v40  ;;  %v216_v46 = vrot.slane %v200_v40, 5  ;;  %v487_v50 = vrot.slane %v200_v40, 3  ;;  %v475_v40 = vrot.slane %v2253_v38, 3 }
 0x102   :  { %v163_v51 = vpop.f32.mrf.mxu0 }
 0x103   :  { %v2445_v53 = vadd.f32 %v2246_v34, %v163_v51  ;;  %v226_v54 = vsel %vm222_vm2, %v215_v27, %v216_v46  ;;  %v495_v55 = vsel %vm491_vm3, %v486_v28, %v487_v50 }
 0x104   :  { %1901 = vmatmul.msk.f32.gmra.mxu2 %vm248_vm1, %v226_v54 }
 0x105   :  { %v185_v58 = vmul.f32 0.1, %v2445_v53 }
 0x107   :  { %v201_v62 = vmax.f32 %v2445_v53, %v185_v58 }
 0x109   :  { %1886 = vmatmul.msk.f32.gmra.mxu3 %vm248_vm1, %v201_v62  ;;  %v217_v63 = vrot.slane %v201_v62, 5  ;;  %v488_v0 = vrot.slane %v201_v62, 3 }
 0x10a   :  { %v166_v1 = vpop.f32.mrf.mxu0 }
 0x10b   :  { %v2456_v2 = vadd.f32 %v2246_v34, %v166_v1  ;;  %v225_v3 = vsel %vm222_vm2, %v216_v46, %v217_v63  ;;  %v494_v8 = vsel %vm491_vm3, %v487_v50, %v488_v0  ;;  %v506_v46 = vsel %vm491_vm3, %v475_v40, %v476_v52  ;;  %v1932_v52 = vld [vmem:[%s3277_s3 + $0x98] sm:$0xff] }
 0x10c   :  { %1902 = vmatmul.msk.f32.gmra.mxu2 %vm248_vm1, %v225_v3  ;;  %810 = vmatpush.msrb.mxu1 %v1932_v52 }
 0x10d   :  { %v186_v10 = vmul.f32 0.1, %v2456_v2 }
 0x10f   :  { %v202_v11 = vmax.f32 %v2456_v2, %v186_v10 }
 0x111   :  { %1887 = vmatmul.msk.f32.gmra.mxu3 %vm248_vm1, %v202_v11  ;;  %v218_v15 = vrot.slane %v202_v11, 5  ;;  %v489_v16 = vrot.slane %v202_v11, 3 }
 0x112   :  { %v169_v17 = vpop.f32.mrf.mxu0 }
 0x113   :  { %v2467_v19 = vadd.f32 %v2246_v34, %v169_v17  ;;  %v224_v24 = vsel %vm222_vm2, %v217_v63, %v218_v15  ;;  %v493_v25 = vsel %vm491_vm3, %v488_v0, %v489_v16 }
 0x114   :  { %1903 = vmatmul.msk.f32.gmra.mxu2 %vm248_vm1, %v224_v24 }
 0x115   :  { %v187_v26 = vmul.f32 0.1, %v2467_v19 }
 0x117   :  { %v203_v27 = vmax.f32 %v2467_v19, %v187_v26 }
 0x119   :  { %1888 = vmatmul.msk.f32.gmra.mxu3 %vm248_vm1, %v203_v27  ;;  %v219_v28 = vrot.slane %v203_v27, 5  ;;  %v490_v32 = vrot.slane %v203_v27, 3 }
 0x11b   :  { %v238_v34 = vsel %vm222_vm2, %v219_v28, %v204_v45  ;;  %v223_v35 = vsel %vm222_vm2, %v218_v15, %v219_v28  ;;  %v492_v39 = vsel %vm491_vm3, %v489_v16, %v490_v32 }
 0x11c   :  { %1889 = vmatmul.msk.f32.vlgmr.msrb.gmra.mxu0 %vm248_vm1, %v238_v34  ;;  %1904 = vmatmul.msk.f32.gmra.mxu2 %vm248_vm1, %v223_v35 }
 0x121   :  { %1909 = vmatmul.msk.f32.vlgmr.msrb.gmra.mxu3 %vm248_vm1, %v506_v46 }
 0x124   :  { %1890 = vmatmul.msk.f32.gmra.mxu0 %vm248_vm1, %v2278_v49 }
 0x129   :  { %1910 = vmatmul.msk.f32.gmra.mxu3 %vm248_vm1, %v2298_v59  ;;  %v1931_v59 = vld [vmem:[%s3277_s3 + $0x90] sm:$0xff] }
 0x12a   :  { %811 = vmatpush.msrb.mxu1 %v1931_v59 }
 0x12c   :  { %1891 = vmatmul.msk.f32.gmra.mxu0 %vm248_vm1, %v2302_v60  ;;  %v1930_v60 = vld [vmem:[%s3277_s3 + $0x88] sm:$0xff] }
 0x12d   :  { %812 = vmatpush.msrb.mxu1 %v1930_v60 }
 0x131   :  { %1911 = vmatmul.msk.f32.gmra.mxu3 %vm248_vm1, %v2318_v5 }
 0x134   :  { %1892 = vmatmul.msk.f32.gmra.mxu0 %vm248_vm1, %v2322_v6  ;;  %v1929_v6 = vld [vmem:[%s3277_s3 + $0x80] sm:$0xff] }
 0x135   :  { %813 = vmatpush.msrb.mxu1 %v1929_v6 }
 0x139   :  { %1912 = vmatmul.msk.f32.gmra.mxu3 %vm248_vm1, %v2332_v13  ;;  %v1968_v13 = vld [vmem:[%s3277_s3 + $0xb8] sm:$0xff] }
 0x13a   :  { %1073 = vmatpush.msra.mxu3 %v1968_v13 }
 0x13c   :  { %1893 = vmatmul.msk.f32.gmra.mxu0 %vm248_vm1, %v2336_v14  ;;  %v314_v14 = vpop.f32.mrf.mxu1 }
 0x141   :  { %1913 = vmatmul.msk.f32.gmra.mxu3 %vm248_vm1, %v2349_v22 }
 0x144   :  { %1894 = vmatmul.msk.f32.gmra.mxu0 %vm248_vm1, %v2353_v23  ;;  %v1967_v23 = vld [vmem:[%s3277_s3 + $0xb0] sm:$0xff] }
 0x145   :  { %1074 = vmatpush.msra.mxu3 %v1967_v23 }
 0x149   :  { %1914 = vmatmul.msk.f32.gmra.mxu3 %vm248_vm1, %v2363_v30  ;;  %v1966_v30 = vld [vmem:[%s3277_s3 + $0xa8] sm:$0xff] }
 0x14a   :  { %1075 = vmatpush.msra.mxu3 %v1966_v30 }
 0x14c   :  { %1895 = vmatmul.msk.f32.gmra.mxu0 %vm248_vm1, %v2367_v31  ;;  %v507_v31 = vsel %vm491_vm3, %v490_v32, %v475_v40 }
 0x151   :  { %1915 = vmatmul.msk.f32.gmra.mxu3 %vm248_vm1, %v2382_v47  ;;  %v1965_v47 = vld [vmem:[%s3277_s3 + $0xa0] sm:$0xff] }
 0x152   :  { %1076 = vmatpush.msra.mxu3 %v1965_v47 }
 0x159   :  { %1916 = vmatmul.msk.f32.gmra.mxu3 %vm248_vm1, %v2395_v61 }
 0x161   :  { %1917 = vmatmul.msk.f32.gmra.mxu3 %vm248_vm1, %v2411_v9  ;;  %v317_v9 = vpop.f32.mrf.mxu1 }
 0x169   :  { %1918 = vmatmul.msk.f32.gmra.mxu3 %vm248_vm1, %v2424_v20  ;;  %v320_v58 = vpop.f32.mrf.mxu1 }
 0x16c   :  { %v2523_v38 = vpop.f32.mrf.mxu3 }
 0x171   :  { %1919 = vmatmul.msk.f32.gmra.mxu3 %vm248_vm1, %v496_v37  ;;  %v323_v16 = vpop.f32.mrf.mxu1 }
 0x174   :  { %v2526_v44 = vpop.f32.mrf.mxu3 }
 0x179   :  { %1920 = vmatmul.msk.f32.gmra.mxu3 %vm248_vm1, %v495_v55  ;;  %v2572_v55 = vld [vmem:[%s3278_s4] ss:$0 sm:$0xff] }
 0x17c   :  { %v2529_v45 = vpop.f32.mrf.mxu3 }
 0x181   :  { %1921 = vmatmul.msk.f32.gmra.mxu3 %vm248_vm1, %v494_v8 }
 0x184   :  { %v2532_v49 = vpop.f32.mrf.mxu3 }
 0x189   :  { %1922 = vmatmul.msk.f32.gmra.mxu3 %vm248_vm1, %v493_v25 }
 0x18c   :  { %v2544_v5 = vpop.f32.mrf.mxu3 }
 0x191   :  { %1923 = vmatmul.msk.f32.gmra.mxu3 %vm248_vm1, %v492_v39 }
 0x194   :  { %v2553_v22 = vpop.f32.mrf.mxu3 }
 0x199   :  { %v427_v61 = vpop.f32.mrf.mxu0  ;;  %1924 = vmatmul.msk.f32.gmra.mxu3 %vm248_vm1, %v507_v31 }
 0x19a   :  { %v428_v50 = vadd.f32 %v427_v61, %v314_v14 }
 0x19c   :  { %v2567_v20 = vpop.f32.mrf.mxu3 }
 0x1a1   :  { %v430_v37 = vpop.f32.mrf.mxu0 }
 0x1a2   :  { %v431_v1 = vadd.f32 %v430_v37, %v317_v9  ;;  %v1928_v37 = vld [vmem:[%s3277_s3 + $0x78] sm:$0xff] }
 0x1a3   :  { %923 = vmatpush.msrb.mxu2 %v1928_v37 }
 0x1a4   :  { %v578_v51 = vpop.f32.mrf.mxu3 }
 0x1a5   :  { %v626_v54 = vadd.f32 %v578_v51, %v428_v50 }
 0x1a7   :  { %v642_v62 = vadd.f32 %v626_v54, %v2249_v36 }
 0x1a9   :  { %v2576_v63 = vadd.f32 %v2572_v55, %v642_v62  ;;  %v433_v0 = vpop.f32.mrf.mxu0 }
 0x1aa   :  { %v434_v24 = vadd.f32 %v433_v0, %v320_v58 }
 0x1ab   :  { %v676_v3 = vmul.f32 0.1, %v2576_v63 }
 0x1ac   :  { %v581_v8 = vpop.f32.mrf.mxu3 }
 0x1ad   :  { %v627_v10 = vadd.f32 %v581_v8, %v431_v1  ;;  %v2580_v11 = vmax.f32 %v2576_v63, %v676_v3 }
 0x1af   :  { %v643_v15 = vadd.f32 %v627_v10, %v2258_v41  ;;  %1933 = vmatmul.msk.f32.vlgmr.msrb.gmra.mxu1 %vm248_vm1, %v2580_v11  ;;  %v976_v32 = vrot.slane %v2580_v11, 3  ;;  %v708_v35 = vrot.slane %v2580_v11, 5 }
 0x1b1   :  { %v2586_v36 = vadd.f32 %v2572_v55, %v643_v15  ;;  %v436_v17 = vpop.f32.mrf.mxu0  ;;  %v448_v15 = vpop.f32.mrf.mxu2 }
 0x1b2   :  { %v437_v59 = vadd.f32 %v436_v17, %v323_v16 }
 0x1b3   :  { %v677_v25 = vmul.f32 0.1, %v2586_v36 }
 0x1b4   :  { %v584_v26 = vpop.f32.mrf.mxu3 }
 0x1b5   :  { %v628_v27 = vadd.f32 %v584_v26, %v434_v24  ;;  %v693_v28 = vmax.f32 %v2586_v36, %v677_v25 }
 0x1b7   :  { %v644_v34 = vadd.f32 %v628_v27, %v2272_v48  ;;  %1934 = vmatmul.msk.f32.gmra.mxu1 %vm248_vm1, %v693_v28  ;;  %v977_v41 = vrot.slane %v693_v28, 3  ;;  %v709_v39 = vrot.slane %v693_v28, 5  ;;  %v326_v48 = vpop.f32.mrf.mxu1 }
 0x1b9   :  { %v2595_v40 = vadd.f32 %v2572_v55, %v644_v34  ;;  %v1006_v46 = vsel %vm491_vm3, %v976_v32, %v977_v41  ;;  %v2605_v52 = vsel %vm222_vm2, %v708_v35, %v709_v39  ;;  %v439_v6 = vpop.f32.mrf.mxu0 }
 0x1ba   :  { %1969 = vmatmul.msk.f32.vlgmr.msra.gmra.mxu3 %vm248_vm1, %v1006_v46 }
 0x1bb   :  { %v678_v60 = vmul.f32 0.1, %v2595_v40 }
 0x1bc   :  { %v587_v13 = vpop.f32.mrf.mxu3 }
 0x1bd   :  { %v629_v14 = vadd.f32 %v587_v13, %v437_v59  ;;  %v694_v23 = vmax.f32 %v2595_v40, %v678_v60  ;;  %v451_v13 = vpop.f32.mrf.mxu2 }
 0x1bf   :  { %v645_v30 = vadd.f32 %v629_v14, %v2286_v56  ;;  %1935 = vmatmul.msk.f32.gmra.mxu1 %vm248_vm1, %v694_v23  ;;  %v978_v31 = vrot.slane %v694_v23, 3  ;;  %v710_v47 = vrot.slane %v694_v23, 5  ;;  %v440_v56 = vadd.f32 %v439_v6, %v326_v48  ;;  %v329_v54 = vpop.f32.mrf.mxu1 }
 0x1c1   :  { %v2613_v61 = vadd.f32 %v2572_v55, %v645_v30  ;;  %v1005_v9 = vsel %vm491_vm3, %v977_v41, %v978_v31  ;;  %v2622_v50 = vsel %vm222_vm2, %v709_v39, %v710_v47  ;;  %v442_v1 = vpop.f32.mrf.mxu0 }
 0x1c2   :  { %1970 = vmatmul.msk.f32.gmra.mxu3 %vm248_vm1, %v1005_v9  ;;  %v443_v25 = vadd.f32 %v442_v1, %v329_v54 }
 0x1c3   :  { %v679_v51 = vmul.f32 0.1, %v2613_v61 }
 0x1c4   :  { %v590_v58 = vpop.f32.mrf.mxu3 }
 0x1c5   :  { %v630_v62 = vadd.f32 %v590_v58, %v440_v56  ;;  %v695_v0 = vmax.f32 %v2613_v61, %v679_v51  ;;  %v1927_v58 = vld [vmem:[%s3277_s3 + $0x70] sm:$0xff]  ;;  %v454_v1 = vpop.f32.mrf.mxu2 }
 0x1c6   :  { %924 = vmatpush.msrb.mxu2 %v1927_v58 }
 0x1c7   :  { %v646_v3 = vadd.f32 %v630_v62, %v2314_v4  ;;  %1936 = vmatmul.msk.f32.gmra.mxu1 %vm248_vm1, %v695_v0  ;;  %v979_v8 = vrot.slane %v695_v0, 3  ;;  %v711_v10 = vrot.slane %v695_v0, 5  ;;  %v332_v34 = vpop.f32.mrf.mxu1 }
 0x1c9   :  { %v2630_v16 = vadd.f32 %v2572_v55, %v646_v3  ;;  %v1004_v17 = vsel %vm491_vm3, %v978_v31, %v979_v8  ;;  %v2636_v24 = vsel %vm222_vm2, %v710_v47, %v711_v10  ;;  %v445_v48 = vpop.f32.mrf.mxu0 }
 0x1ca   :  { %1971 = vmatmul.msk.f32.gmra.mxu3 %vm248_vm1, %v1004_v17  ;;  %v446_v14 = vadd.f32 %v445_v48, %v332_v34 }
 0x1cb   :  { %v680_v4 = vmul.f32 0.1, %v2630_v16 }
 0x1cc   :  { %v593_v26 = vpop.f32.mrf.mxu3 }
 0x1cd   :  { %v631_v27 = vadd.f32 %v593_v26, %v443_v25  ;;  %v696_v28 = vmax.f32 %v2630_v16, %v680_v4  ;;  %v457_v48 = vpop.f32.mrf.mxu2 }
 0x1cf   :  { %v647_v41 = vadd.f32 %v631_v27, %v2328_v12  ;;  %1937 = vmatmul.msk.f32.gmra.mxu1 %vm248_vm1, %v696_v28  ;;  %v980_v39 = vrot.slane %v696_v28, 3  ;;  %v712_v46 = vrot.slane %v696_v28, 5  ;;  %v335_v56 = vpop.f32.mrf.mxu1 }
 0x1d1   :  { %v2644_v59 = vadd.f32 %v2572_v55, %v647_v41  ;;  %v1003_v60 = vsel %vm491_vm3, %v979_v8, %v980_v39  ;;  %v2650_v6 = vsel %vm222_vm2, %v711_v10, %v712_v46 }
 0x1d2   :  { %1972 = vmatmul.msk.f32.gmra.mxu3 %vm248_vm1, %v1003_v60 }
 0x1d3   :  { %v681_v12 = vmul.f32 0.1, %v2644_v59 }
 0x1d4   :  { %v596_v23 = vpop.f32.mrf.mxu3 }
 0x1d5   :  { %v632_v30 = vadd.f32 %v596_v23, %v446_v14  ;;  %v697_v31 = vmax.f32 %v2644_v59, %v681_v12 }
 0x1d7   :  { %v648_v47 = vadd.f32 %v632_v30, %v2345_v21  ;;  %1938 = vmatmul.msk.f32.gmra.mxu1 %vm248_vm1, %v697_v31  ;;  %v981_v9 = vrot.slane %v697_v31, 3  ;;  %v713_v37 = vrot.slane %v697_v31, 5  ;;  %v449_v21 = vadd.f32 %v448_v15, %v335_v56  ;;  %v338_v28 = vpop.f32.mrf.mxu1 }
 0x1d8   :  { %v452_v34 = vadd.f32 %v451_v13, %v338_v28  ;;  %v1926_v13 = vld [vmem:[%s3277_s3 + $0x68] sm:$0xff] }
 0x1d9   :  { %v2658_v51 = vadd.f32 %v2572_v55, %v648_v47  ;;  %v1002_v54 = vsel %vm491_vm3, %v980_v39, %v981_v9  ;;  %v2667_v62 = vsel %vm222_vm2, %v712_v46, %v713_v37  ;;  %925 = vmatpush.msrb.mxu2 %v1926_v13 }
 0x1da   :  { %1973 = vmatmul.msk.f32.gmra.mxu3 %vm248_vm1, %v1002_v54 }
 0x1db   :  { %v682_v0 = vmul.f32 0.1, %v2658_v51 }
 0x1dc   :  { %v599_v3 = vpop.f32.mrf.mxu3 }
 0x1dd   :  { %v633_v8 = vadd.f32 %v599_v3, %v449_v21  ;;  %v698_v10 = vmax.f32 %v2658_v51, %v682_v0  ;;  %v460_v0 = vpop.f32.mrf.mxu2 }
 0x1df   :  { %v649_v17 = vadd.f32 %v633_v8, %v2359_v29  ;;  %1939 = vmatmul.msk.f32.gmra.mxu1 %vm248_vm1, %v698_v10  ;;  %v982_v25 = vrot.slane %v698_v10, 3  ;;  %v714_v4 = vrot.slane %v698_v10, 5 }
 0x1e1   :  { %v2675_v26 = vadd.f32 %v2572_v55, %v649_v17  ;;  %v1001_v27 = vsel %vm491_vm3, %v981_v9, %v982_v25  ;;  %v2681_v15 = vsel %vm222_vm2, %v713_v37, %v714_v4 }
 0x1e2   :  { %1974 = vmatmul.msk.f32.gmra.mxu3 %vm248_vm1, %v1001_v27 }
 0x1e3   :  { %v683_v29 = vmul.f32 0.1, %v2675_v26 }
 0x1e4   :  { %v602_v41 = vpop.f32.mrf.mxu3 }
 0x1e5   :  { %v634_v39 = vadd.f32 %v602_v41, %v452_v34  ;;  %v699_v46 = vmax.f32 %v2675_v26, %v683_v29 }
 0x1e7   :  { %v650_v60 = vadd.f32 %v634_v39, %v2376_v43  ;;  %1940 = vmatmul.msk.f32.gmra.mxu1 %vm248_vm1, %v699_v46  ;;  %v983_v14 = vrot.slane %v699_v46, 3  ;;  %v715_v12 = vrot.slane %v699_v46, 5  ;;  %v455_v43 = vadd.f32 %v454_v1, %v2523_v38  ;;  %v463_v39 = vpop.f32.mrf.mxu2 }
 0x1e8   :  { %v458_v1 = vadd.f32 %v457_v48, %v2526_v44  ;;  %v1925_v44 = vld [vmem:[%s3277_s3 + $0x60] sm:$0xff] }
 0x1e9   :  { %v2689_v23 = vadd.f32 %v2572_v55, %v650_v60  ;;  %v1000_v30 = vsel %vm491_vm3, %v982_v25, %v983_v14  ;;  %v2698_v31 = vsel %vm222_vm2, %v714_v4, %v715_v12  ;;  %926 = vmatpush.msrb.mxu2 %v1925_v44 }
 0x1ea   :  { %1975 = vmatmul.msk.f32.gmra.mxu3 %vm248_vm1, %v1000_v30 }
 0x1eb   :  { %v684_v47 = vmul.f32 0.1, %v2689_v23 }
 0x1ec   :  { %v605_v9 = vpop.f32.mrf.mxu3 }
 0x1ed   :  { %v635_v37 = vadd.f32 %v605_v9, %v455_v43  ;;  %v700_v56 = vmax.f32 %v2689_v23, %v684_v47  ;;  %v464_v9 = vadd.f32 %v463_v39, %v2532_v49 }
 0x1ef   :  { %v651_v54 = vadd.f32 %v635_v37, %v2389_v57  ;;  %1941 = vmatmul.msk.f32.gmra.mxu1 %vm248_vm1, %v700_v56  ;;  %v984_v58 = vrot.slane %v700_v56, 3  ;;  %v716_v21 = vrot.slane %v700_v56, 5  ;;  %v466_v37 = vpop.f32.mrf.mxu2 }
 0x1f1   :  { %v2707_v3 = vadd.f32 %v2572_v55, %v651_v54  ;;  %v999_v8 = vsel %vm491_vm3, %v983_v14, %v984_v58  ;;  %v2713_v38 = vsel %vm222_vm2, %v715_v12, %v716_v21 }
 0x1f2   :  { %1976 = vmatmul.msk.f32.gmra.mxu3 %vm248_vm1, %v999_v8 }
 0x1f3   :  { %v685_v57 = vmul.f32 0.1, %v2707_v3 }
 0x1f4   :  { %v608_v10 = vpop.f32.mrf.mxu3 }
 0x1f5   :  { %v636_v17 = vadd.f32 %v608_v10, %v458_v1  ;;  %v701_v25 = vmax.f32 %v2707_v3, %v685_v57  ;;  %v467_v10 = vadd.f32 %v466_v37, %v2544_v5 }
 0x1f7   :  { %v652_v4 = vadd.f32 %v636_v17, %v2405_v7  ;;  %1942 = vmatmul.msk.f32.gmra.mxu1 %vm248_vm1, %v701_v25  ;;  %v985_v27 = vrot.slane %v701_v25, 3  ;;  %v717_v28 = vrot.slane %v701_v25, 5  ;;  %v461_v7 = vadd.f32 %v460_v0, %v2529_v45 }
 0x1f9   :  { %v2722_v34 = vadd.f32 %v2572_v55, %v652_v4  ;;  %v998_v29 = vsel %vm491_vm3, %v984_v58, %v985_v27  ;;  %v2731_v41 = vsel %vm222_vm2, %v716_v21, %v717_v28 }
 0x1fa   :  { %1977 = vmatmul.msk.f32.gmra.mxu3 %vm248_vm1, %v998_v29 }
 0x1fb   :  { %v686_v46 = vmul.f32 0.1, %v2722_v34 }
 0x1fc   :  { %v611_v48 = vpop.f32.mrf.mxu3 }
 0x1fd   :  { %v637_v60 = vadd.f32 %v611_v48, %v461_v7  ;;  %v702_v14 = vmax.f32 %v2722_v34, %v686_v46 }
 0x1ff   :  { %v653_v12 = vadd.f32 %v637_v60, %v2418_v18  ;;  %1943 = vmatmul.msk.f32.gmra.mxu1 %vm248_vm1, %v702_v14  ;;  %v986_v30 = vrot.slane %v702_v14, 3  ;;  %v718_v13 = vrot.slane %v702_v14, 5 }
 0x201   :  { %v2740_v43 = vadd.f32 %v2572_v55, %v653_v12  ;;  %v997_v47 = vsel %vm491_vm3, %v985_v27, %v986_v30  ;;  %v2746_v45 = vsel %vm222_vm2, %v717_v28, %v718_v13  ;;  %v469_v27 = vpop.f32.mrf.mxu2 }
 0x202   :  { %1978 = vmatmul.msk.f32.gmra.mxu3 %vm248_vm1, %v997_v47  ;;  %v470_v46 = vadd.f32 %v469_v27, %v2553_v22 }
 0x203   :  { %v687_v18 = vmul.f32 0.1, %v2740_v43 }
 0x204   :  { %v614_v56 = vpop.f32.mrf.mxu3 }
 0x205   :  { %v638_v54 = vadd.f32 %v614_v56, %v464_v9  ;;  %v703_v58 = vmax.f32 %v2740_v43, %v687_v18 }
 0x207   :  { %v654_v21 = vadd.f32 %v638_v54, %v2434_v33  ;;  %1944 = vmatmul.msk.f32.gmra.mxu1 %vm248_vm1, %v703_v58  ;;  %v987_v0 = vrot.slane %v703_v58, 3  ;;  %v719_v8 = vrot.slane %v703_v58, 5 }
 0x209   :  { %v2755_v1 = vadd.f32 %v2572_v55, %v654_v21  ;;  %v996_v57 = vsel %vm491_vm3, %v986_v30, %v987_v0  ;;  %v2761_v49 = vsel %vm222_vm2, %v718_v13, %v719_v8  ;;  %v472_v47 = vpop.f32.mrf.mxu2 }
 0x20a   :  { %1979 = vmatmul.msk.f32.gmra.mxu3 %vm248_vm1, %v996_v57  ;;  %v473_v37 = vadd.f32 %v472_v47, %v2567_v20 }
 0x20b   :  { %v688_v33 = vmul.f32 0.1, %v2755_v1 }
 0x20c   :  { %v617_v17 = vpop.f32.mrf.mxu3 }
 0x20d   :  { %v639_v25 = vadd.f32 %v617_v17, %v467_v10  ;;  %v704_v4 = vmax.f32 %v2755_v1, %v688_v33 }
 0x20f   :  { %v655_v28 = vadd.f32 %v639_v25, %v2445_v53  ;;  %1945 = vmatmul.msk.f32.gmra.mxu1 %vm248_vm1, %v704_v4  ;;  %v988_v29 = vrot.slane %v704_v4, 3  ;;  %v720_v44 = vrot.slane %v704_v4, 5 }
 0x211   :  { %v2770_v39 = vadd.f32 %v2572_v55, %v655_v28  ;;  %v995_v7 = vsel %vm491_vm3, %v987_v0, %v988_v29  ;;  %v727_v5 = vsel %vm222_vm2, %v719_v8, %v720_v44 }
 0x212   :  { %1980 = vmatmul.msk.f32.gmra.mxu3 %vm248_vm1, %v995_v7 }
 0x213   :  { %v689_v48 = vmul.f32 0.1, %v2770_v39 }
 0x214   :  { %v620_v53 = vpop.f32.mrf.mxu3 }
 0x215   :  { %v640_v60 = vadd.f32 %v620_v53, %v470_v46  ;;  %v705_v14 = vmax.f32 %v2770_v39, %v689_v48  ;;  %v2877_v53 = vld [vmem:[%s3278_s4 + $0x1] ss:$0 sm:$0xff] }
 0x217   :  { %v656_v12 = vadd.f32 %v640_v60, %v2456_v2  ;;  %1946 = vmatmul.msk.f32.gmra.mxu1 %vm248_vm1, %v705_v14  ;;  %v989_v30 = vrot.slane %v705_v14, 3  ;;  %v721_v13 = vrot.slane %v705_v14, 5 }
 0x219   :  { %v2783_v9 = vadd.f32 %v2572_v55, %v656_v12  ;;  %v994_v18 = vsel %vm491_vm3, %v988_v29, %v989_v30  ;;  %v726_v22 = vsel %vm222_vm2, %v720_v44, %v721_v13 }
 0x21a   :  { %1981 = vmatmul.msk.f32.gmra.mxu3 %vm248_vm1, %v994_v18 }
 0x21b   :  { %v690_v2 = vmul.f32 0.1, %v2783_v9 }
 0x21c   :  { %v623_v56 = vpop.f32.mrf.mxu3 }
 0x21d   :  { %v641_v54 = vadd.f32 %v623_v56, %v473_v37  ;;  %v706_v58 = vmax.f32 %v2783_v9, %v690_v2  ;;  %v1987_v56 = vld [vmem:[%s3277_s3 + $0xd0] sm:$0xff] }
 0x21f   :  { %v657_v21 = vadd.f32 %v641_v54, %v2467_v19  ;;  %1947 = vmatmul.msk.f32.gmra.mxu1 %vm248_vm1, %v706_v58  ;;  %v990_v0 = vrot.slane %v706_v58, 3  ;;  %v722_v8 = vrot.slane %v706_v58, 5 }
 0x221   :  { %v2796_v57 = vadd.f32 %v2572_v55, %v657_v21  ;;  %v993_v10 = vsel %vm491_vm3, %v989_v30, %v990_v0  ;;  %v725_v20 = vsel %vm222_vm2, %v721_v13, %v722_v8 }
 0x222   :  { %1982 = vmatmul.msk.f32.gmra.mxu3 %vm248_vm1, %v993_v10 }
 0x223   :  { %v691_v33 = vmul.f32 0.1, %v2796_v57 }
 0x225   :  { %v707_v17 = vmax.f32 %v2796_v57, %v691_v33 }
 0x227   :  { %1948 = vmatmul.msk.f32.gmra.mxu1 %vm248_vm1, %v707_v17  ;;  %v723_v19 = vrot.slane %v707_v17, 5  ;;  %v991_v25 = vrot.slane %v707_v17, 3 }
 0x229   :  { %v739_v55 = vsel %vm222_vm2, %v723_v19, %v708_v35  ;;  %v992_v4 = vsel %vm491_vm3, %v990_v0, %v991_v25  ;;  %v724_v27 = vsel %vm222_vm2, %v722_v8, %v723_v19  ;;  %v1007_v28 = vsel %vm491_vm3, %v991_v25, %v976_v32  ;;  %v1992_v35 = vld [vmem:[%s3277_s3 + $0xf8] sm:$0xff] }
 0x22a   :  { %1949 = vmatmul.msk.f32.vlgmr.msrb.gmra.mxu2 %vm248_vm1, %v739_v55  ;;  %1983 = vmatmul.msk.f32.gmra.mxu3 %vm248_vm1, %v992_v4 }
 0x22b   :  { %1310 = vmatpush.msra.mxu0 %v1992_v35 }
 0x22c   :  { %v815_v11 = vpop.f32.mrf.mxu1 }
 0x232   :  { %1950 = vmatmul.msk.f32.gmra.mxu2 %vm248_vm1, %v2605_v52  ;;  %1984 = vmatmul.msk.f32.gmra.mxu3 %vm248_vm1, %v1007_v28  ;;  %v1991_v52 = vld [vmem:[%s3277_s3 + $0xf0] sm:$0xff] }
 0x233   :  { %1311 = vmatpush.msra.mxu0 %v1991_v52 }
 0x23a   :  { %1951 = vmatmul.msk.f32.gmra.mxu2 %vm248_vm1, %v2622_v50  ;;  %v2028_v50 = vld [vmem:[%s3277_s3 + $0x118] sm:$0xff] }
 0x23b   :  { %1573 = vmatpush.msra.mxu2 %v2028_v50 }
 0x23d   :  { %v1078_v32 = vpop.f32.mrf.mxu3 }
 0x242   :  { %1952 = vmatmul.msk.f32.gmra.mxu2 %vm248_vm1, %v2636_v24  ;;  %v1990_v24 = vld [vmem:[%s3277_s3 + $0xe8] sm:$0xff] }
 0x243   :  { %1312 = vmatpush.msra.mxu0 %v1990_v24 }
 0x24a   :  { %1953 = vmatmul.msk.f32.gmra.mxu2 %vm248_vm1, %v2650_v6  ;;  %v1989_v6 = vld [vmem:[%s3277_s3 + $0xe0] sm:$0xff] }
 0x24b   :  { %1313 = vmatpush.msra.mxu0 %v1989_v6 }
 0x252   :  { %1954 = vmatmul.msk.f32.gmra.mxu2 %vm248_vm1, %v2667_v62  ;;  %v818_v62 = vpop.f32.mrf.mxu1 }
 0x25a   :  { %1955 = vmatmul.msk.f32.gmra.mxu2 %vm248_vm1, %v2681_v15  ;;  %v1081_v15 = vpop.f32.mrf.mxu3 }
 0x262   :  { %1956 = vmatmul.msk.f32.gmra.mxu2 %vm248_vm1, %v2698_v31  ;;  %v1988_v31 = vld [vmem:[%s3277_s3 + $0xd8] sm:$0xff]  ;;  %v1084_v29 = vpop.f32.mrf.mxu3 }
 0x263   :  { %1423 = vmatpush.msra.mxu1 %v1988_v31 }
 0x265   :  { %1424 = vmatpush.msra.mxu1 %v1987_v56 }
 0x26a   :  { %1957 = vmatmul.msk.f32.gmra.mxu2 %vm248_vm1, %v2713_v38  ;;  %v2027_v38 = vld [vmem:[%s3277_s3 + $0x110] sm:$0xff]  ;;  %v1087_v46 = vpop.f32.mrf.mxu3 }
 0x26b   :  { %1574 = vmatpush.msra.mxu2 %v2027_v38 }
 0x272   :  { %1958 = vmatmul.msk.f32.gmra.mxu2 %vm248_vm1, %v2731_v41  ;;  %v2026_v41 = vld [vmem:[%s3277_s3 + $0x108] sm:$0xff]  ;;  %v1090_v37 = vpop.f32.mrf.mxu3 }
 0x273   :  { %1575 = vmatpush.msra.mxu2 %v2026_v41 }
 0x27a   :  { %1959 = vmatmul.msk.f32.gmra.mxu2 %vm248_vm1, %v2746_v45  ;;  %v821_v45 = vpop.f32.mrf.mxu1  ;;  %v1093_v25 = vpop.f32.mrf.mxu3 }
 0x282   :  { %1960 = vmatmul.msk.f32.gmra.mxu2 %vm248_vm1, %v2761_v49  ;;  %v2025_v49 = vld [vmem:[%s3277_s3 + $0x100] sm:$0xff]  ;;  %v824_v44 = vpop.f32.mrf.mxu1  ;;  %v1096_v38 = vpop.f32.mrf.mxu3 }
 0x283   :  { %1576 = vmatpush.msra.mxu2 %v2025_v49 }
 0x28a   :  { %1961 = vmatmul.msk.f32.gmra.mxu2 %vm248_vm1, %v727_v5  ;;  %v827_v47 = vpop.f32.mrf.mxu1 }
 0x292   :  { %1962 = vmatmul.msk.f32.gmra.mxu2 %vm248_vm1, %v726_v22  ;;  %v830_v10 = vpop.f32.mrf.mxu1 }
 0x29a   :  { %1963 = vmatmul.msk.f32.gmra.mxu2 %vm248_vm1, %v725_v20  ;;  %v833_v6 = vpop.f32.mrf.mxu1 }
 0x2a2   :  { %1964 = vmatmul.msk.f32.gmra.mxu2 %vm248_vm1, %v724_v27 }
 0x2ad   :  { %v928_v7 = vpop.f32.mrf.mxu2 }
 0x2ae   :  { %v929_v5 = vadd.f32 %v928_v7, %v815_v11 }
 0x2b0   :  { %v1126_v48 = vadd.f32 %v1078_v32, %v929_v5 }
 0x2b2   :  { %v1142_v60 = vadd.f32 %v1126_v48, %v2576_v63 }
 0x2b4   :  { %v2881_v14 = vadd.f32 %v2877_v53, %v1142_v60 }
 0x2b5   :  { %v931_v12 = vpop.f32.mrf.mxu2 }
 0x2b6   :  { %v1176_v30 = vmul.f32 0.1, %v2881_v14  ;;  %v932_v13 = vadd.f32 %v931_v12, %v818_v62  ;;  %v836_v12 = vpop.f32.mrf.mxu1 }
 0x2b8   :  { %v1127_v18 = vadd.f32 %v1081_v15, %v932_v13  ;;  %v2885_v22 = vmax.f32 %v2881_v14, %v1176_v30 }
 0x2ba   :  { %v1143_v2 = vadd.f32 %v1127_v18, %v2586_v36  ;;  %1993 = vmatmul.msk.f32.vlgmr.msra.gmra.mxu0 %vm248_vm1, %v2885_v22  ;;  %v1476_v36 = vrot.slane %v2885_v22, 3  ;;  %v1208_v17 = vrot.slane %v2885_v22, 5  ;;  %v1686_v22 = vld [vmem:[%s3279_s5 + $0x50] sm:$0xff] }
 0x2bc   :  { %v2891_v63 = vadd.f32 %v2877_v53, %v1143_v2 }
 0x2bd   :  { %v934_v54 = vpop.f32.mrf.mxu2 }
 0x2be   :  { %v935_v58 = vadd.f32 %v934_v54, %v821_v45  ;;  %v1177_v21 = vmul.f32 0.1, %v2891_v63 }
 0x2c0   :  { %v1128_v0 = vadd.f32 %v1084_v29, %v935_v58  ;;  %v1193_v8 = vmax.f32 %v2891_v63, %v1177_v21 }
 0x2c2   :  { %v1144_v20 = vadd.f32 %v1128_v0, %v2595_v40  ;;  %1994 = vmatmul.msk.f32.gmra.mxu0 %vm248_vm1, %v1193_v8  ;;  %v1477_v33 = vrot.slane %v1193_v8, 3  ;;  %v1209_v19 = vrot.slane %v1193_v8, 5  ;;  %v1986_v0 = vld [vmem:[%s3277_s3 + $0xc8] sm:$0xff] }
 0x2c3   :  { %1425 = vmatpush.msra.mxu1 %v1986_v0 }
 0x2c4   :  { %v2903_v55 = vadd.f32 %v2877_v53, %v1144_v20  ;;  %v1506_v4 = vsel %vm491_vm3, %v1476_v36, %v1477_v33  ;;  %v2913_v40 = vsel %vm222_vm2, %v1208_v17, %v1209_v19 }
 0x2c5   :  { %v937_v27 = vpop.f32.mrf.mxu2  ;;  %2029 = vmatmul.msk.f32.vlgmr.msra.gmra.mxu2 %vm248_vm1, %v1506_v4 }
 0x2c6   :  { %v938_v28 = vadd.f32 %v937_v27, %v824_v44  ;;  %v1178_v11 = vmul.f32 0.1, %v2903_v55 }
 0x2c8   :  { %v1129_v32 = vadd.f32 %v1087_v46, %v938_v28  ;;  %v1194_v35 = vmax.f32 %v2903_v55, %v1178_v11 }
 0x2ca   :  { %v1145_v52 = vadd.f32 %v1129_v32, %v2613_v61  ;;  %1995 = vmatmul.msk.f32.gmra.mxu0 %vm248_vm1, %v1194_v35  ;;  %v1478_v50 = vrot.slane %v1194_v35, 3  ;;  %v1210_v24 = vrot.slane %v1194_v35, 5 }
 0x2cc   :  { %v2921_v62 = vadd.f32 %v2877_v53, %v1145_v52  ;;  %v1505_v15 = vsel %vm491_vm3, %v1477_v33, %v1478_v50  ;;  %v2927_v31 = vsel %vm222_vm2, %v1209_v19, %v1210_v24  ;;  %v839_v33 = vpop.f32.mrf.mxu1 }
 0x2cd   :  { %v940_v41 = vpop.f32.mrf.mxu2  ;;  %2030 = vmatmul.msk.f32.gmra.mxu2 %vm248_vm1, %v1505_v15 }
 0x2ce   :  { %v941_v61 = vadd.f32 %v940_v41, %v827_v47  ;;  %v1179_v45 = vmul.f32 0.1, %v2921_v62  ;;  %v1099_v47 = vpop.f32.mrf.mxu3 }
 0x2d0   :  { %v1130_v49 = vadd.f32 %v1090_v37, %v941_v61  ;;  %v1195_v29 = vmax.f32 %v2921_v62, %v1179_v45 }
 0x2d2   :  { %v1146_v44 = vadd.f32 %v1130_v49, %v2630_v16  ;;  %1996 = vmatmul.msk.f32.gmra.mxu0 %vm248_vm1, %v1195_v29  ;;  %v1479_v7 = vrot.slane %v1195_v29, 3  ;;  %v1211_v5 = vrot.slane %v1195_v29, 5 }
 0x2d4   :  { %v2935_v46 = vadd.f32 %v2877_v53, %v1146_v44  ;;  %v1504_v48 = vsel %vm491_vm3, %v1478_v50, %v1479_v7  ;;  %v2941_v60 = vsel %vm222_vm2, %v1210_v24, %v1211_v5 }
 0x2d5   :  { %v943_v30 = vpop.f32.mrf.mxu2  ;;  %2031 = vmatmul.msk.f32.gmra.mxu2 %vm248_vm1, %v1504_v48 }
 0x2d6   :  { %v944_v13 = vadd.f32 %v943_v30, %v830_v10  ;;  %v1180_v16 = vmul.f32 0.1, %v2935_v46  ;;  %v1102_v4 = vpop.f32.mrf.mxu3 }
 0x2d8   :  { %v1131_v18 = vadd.f32 %v1093_v25, %v944_v13  ;;  %v1196_v37 = vmax.f32 %v2935_v46, %v1180_v16 }
 0x2da   :  { %v1147_v2 = vadd.f32 %v1131_v18, %v2644_v59  ;;  %1997 = vmatmul.msk.f32.gmra.mxu0 %vm248_vm1, %v1196_v37  ;;  %v1480_v56 = vrot.slane %v1196_v37, 3  ;;  %v1212_v54 = vrot.slane %v1196_v37, 5 }
 0x2dc   :  { %v2949_v58 = vadd.f32 %v2877_v53, %v1147_v2  ;;  %v1503_v21 = vsel %vm491_vm3, %v1479_v7, %v1480_v56  ;;  %v2958_v8 = vsel %vm222_vm2, %v1211_v5, %v1212_v54 }
 0x2dd   :  { %v946_v10 = vpop.f32.mrf.mxu2  ;;  %2032 = vmatmul.msk.f32.gmra.mxu2 %vm248_vm1, %v1503_v21 }
 0x2de   :  { %v947_v59 = vadd.f32 %v946_v10, %v833_v6  ;;  %v1181_v20 = vmul.f32 0.1, %v2949_v58  ;;  %v1105_v49 = vpop.f32.mrf.mxu3 }
 0x2e0   :  { %v1132_v19 = vadd.f32 %v1096_v38, %v947_v59  ;;  %v1197_v25 = vmax.f32 %v2949_v58, %v1181_v20  ;;  %v842_v38 = vpop.f32.mrf.mxu1 }
 0x2e2   :  { %v1148_v27 = vadd.f32 %v1132_v19, %v2658_v51  ;;  %1998 = vmatmul.msk.f32.gmra.mxu0 %vm248_vm1, %v1197_v25  ;;  %v1481_v28 = vrot.slane %v1197_v25, 3  ;;  %v1213_v11 = vrot.slane %v1197_v25, 5 }
 0x2e4   :  { %v2966_v32 = vadd.f32 %v2877_v53, %v1148_v27  ;;  %v1502_v35 = vsel %vm491_vm3, %v1480_v56, %v1481_v28  ;;  %v2972_v52 = vsel %vm222_vm2, %v1212_v54, %v1213_v11  ;;  %v1985_v27 = vld [vmem:[%s3277_s3 + $0xc0] sm:$0xff] }
 0x2e5   :  { %v949_v50 = vpop.f32.mrf.mxu2  ;;  %2033 = vmatmul.msk.f32.gmra.mxu2 %vm248_vm1, %v1502_v35  ;;  %1426 = vmatpush.msra.mxu1 %v1985_v27 }
 0x2e6   :  { %v950_v24 = vadd.f32 %v949_v50, %v836_v12  ;;  %v1182_v51 = vmul.f32 0.1, %v2966_v32  ;;  %v1108_v54 = vpop.f32.mrf.mxu3 }
 0x2e8   :  { %v1133_v6 = vadd.f32 %v1099_v47, %v950_v24  ;;  %v1198_v15 = vmax.f32 %v2966_v32, %v1182_v51  ;;  %v845_v18 = vpop.f32.mrf.mxu1 }
 0x2ea   :  { %v1149_v41 = vadd.f32 %v1133_v6, %v2675_v26  ;;  %1999 = vmatmul.msk.f32.gmra.mxu0 %vm248_vm1, %v1198_v15  ;;  %v1482_v61 = vrot.slane %v1198_v15, 3  ;;  %v1214_v45 = vrot.slane %v1198_v15, 5 }
 0x2ec   :  { %v2980_v29 = vadd.f32 %v2877_v53, %v1149_v41  ;;  %v1501_v44 = vsel %vm491_vm3, %v1481_v28, %v1482_v61  ;;  %v2986_v7 = vsel %vm222_vm2, %v1213_v11, %v1214_v45 }
 0x2ed   :  { %v952_v5 = vpop.f32.mrf.mxu2  ;;  %2034 = vmatmul.msk.f32.gmra.mxu2 %vm248_vm1, %v1501_v44 }
 0x2ee   :  { %v953_v48 = vadd.f32 %v952_v5, %v839_v33  ;;  %v1183_v26 = vmul.f32 0.1, %v2980_v29  ;;  %v1111_v24 = vpop.f32.mrf.mxu3 }
 0x2f0   :  { %v1134_v12 = vadd.f32 %v1102_v4, %v953_v48  ;;  %v1199_v30 = vmax.f32 %v2980_v29, %v1183_v26  ;;  %v848_v11 = vpop.f32.mrf.mxu1 }
 0x2f2   :  { %v1150_v13 = vadd.f32 %v1134_v12, %v2689_v23  ;;  %2000 = vmatmul.msk.f32.gmra.mxu0 %vm248_vm1, %v1199_v30  ;;  %v1483_v16 = vrot.slane %v1199_v30, 3  ;;  %v1215_v47 = vrot.slane %v1199_v30, 5 }
 0x2f4   :  { %v2994_v37 = vadd.f32 %v2877_v53, %v1150_v13  ;;  %v1500_v2 = vsel %vm491_vm3, %v1482_v61, %v1483_v16  ;;  %v3000_v56 = vsel %vm222_vm2, %v1214_v45, %v1215_v47 }
 0x2f5   :  { %v955_v21 = vpop.f32.mrf.mxu2  ;;  %2035 = vmatmul.msk.f32.gmra.mxu2 %vm248_vm1, %v1500_v2 }
 0x2f6   :  { %v956_v23 = vadd.f32 %v955_v21, %v842_v38  ;;  %v1184_v0 = vmul.f32 0.1, %v2994_v37  ;;  %v1114_v30 = vpop.f32.mrf.mxu3 }
 0x2f8   :  { %v1135_v10 = vadd.f32 %v1105_v49, %v956_v23  ;;  %v1200_v59 = vmax.f32 %v2994_v37, %v1184_v0  ;;  %v851_v48 = vpop.f32.mrf.mxu1 }
 0x2fa   :  { %v1151_v20 = vadd.f32 %v1135_v10, %v2707_v3  ;;  %2001 = vmatmul.msk.f32.gmra.mxu0 %vm248_vm1, %v1200_v59  ;;  %v1484_v33 = vrot.slane %v1200_v59, 3  ;;  %v1216_v19 = vrot.slane %v1200_v59, 5 }
 0x2fc   :  { %v3008_v25 = vadd.f32 %v2877_v53, %v1151_v20  ;;  %v1499_v4 = vsel %vm491_vm3, %v1483_v16, %v1484_v33  ;;  %v3017_v28 = vsel %vm222_vm2, %v1215_v47, %v1216_v19 }
 0x2fd   :  { %v958_v3 = vpop.f32.mrf.mxu2  ;;  %2036 = vmatmul.msk.f32.gmra.mxu2 %vm248_vm1, %v1499_v4 }
 0x2fe   :  { %v959_v35 = vadd.f32 %v958_v3, %v845_v18  ;;  %v1185_v50 = vmul.f32 0.1, %v3008_v25  ;;  %v1117_v4 = vpop.f32.mrf.mxu3 }
 0x300   :  { %v1136_v51 = vadd.f32 %v1108_v54, %v959_v35  ;;  %v1201_v6 = vmax.f32 %v3008_v25, %v1185_v50  ;;  %v854_v59 = vpop.f32.mrf.mxu1 }
 0x302   :  { %v1152_v15 = vadd.f32 %v1136_v51, %v2722_v34  ;;  %2002 = vmatmul.msk.f32.gmra.mxu0 %vm248_vm1, %v1201_v6  ;;  %v1485_v38 = vrot.slane %v1201_v6, 3  ;;  %v1217_v41 = vrot.slane %v1201_v6, 5 }
 0x304   :  { %v3025_v61 = vadd.f32 %v2877_v53, %v1152_v15  ;;  %v1498_v45 = vsel %vm491_vm3, %v1484_v33, %v1485_v38  ;;  %v3031_v49 = vsel %vm222_vm2, %v1216_v19, %v1217_v41 }
 0x305   :  { %v961_v44 = vpop.f32.mrf.mxu2  ;;  %2037 = vmatmul.msk.f32.gmra.mxu2 %vm248_vm1, %v1498_v45 }
 0x306   :  { %v962_v5 = vadd.f32 %v961_v44, %v848_v11  ;;  %v1186_v34 = vmul.f32 0.1, %v3025_v61 }
 0x308   :  { %v1137_v26 = vadd.f32 %v1111_v24, %v962_v5  ;;  %v1202_v12 = vmax.f32 %v3025_v61, %v1186_v34  ;;  %v1120_v34 = vpop.f32.mrf.mxu3 }
 0x30a   :  { %v1153_v13 = vadd.f32 %v1137_v26, %v2740_v43  ;;  %2003 = vmatmul.msk.f32.gmra.mxu0 %vm248_vm1, %v1202_v12  ;;  %v1486_v16 = vrot.slane %v1202_v12, 3  ;;  %v1218_v47 = vrot.slane %v1202_v12, 5 }
 0x30c   :  { %v3039_v18 = vadd.f32 %v2877_v53, %v1153_v13  ;;  %v1497_v2 = vsel %vm491_vm3, %v1485_v38, %v1486_v16  ;;  %v3045_v54 = vsel %vm222_vm2, %v1217_v41, %v1218_v47  ;;  %v857_v41 = vpop.f32.mrf.mxu1 }
 0x30d   :  { %v964_v21 = vpop.f32.mrf.mxu2  ;;  %2038 = vmatmul.msk.f32.gmra.mxu2 %vm248_vm1, %v1497_v2 }
 0x30e   :  { %v965_v23 = vadd.f32 %v964_v21, %v851_v48  ;;  %v1187_v43 = vmul.f32 0.1, %v3039_v18 }
 0x310   :  { %v1138_v0 = vadd.f32 %v1114_v30, %v965_v23  ;;  %v1203_v10 = vmax.f32 %v3039_v18, %v1187_v43 }
 0x312   :  { %v1154_v20 = vadd.f32 %v1138_v0, %v2755_v1  ;;  %2004 = vmatmul.msk.f32.gmra.mxu0 %vm248_vm1, %v1203_v10  ;;  %v1487_v33 = vrot.slane %v1203_v10, 3  ;;  %v1219_v19 = vrot.slane %v1203_v10, 5 }
 0x314   :  { %v3053_v27 = vadd.f32 %v2877_v53, %v1154_v20  ;;  %v1496_v11 = vsel %vm491_vm3, %v1486_v16, %v1487_v33  ;;  %v3059_v3 = vsel %vm222_vm2, %v1218_v47, %v1219_v19  ;;  %v860_v43 = vpop.f32.mrf.mxu1  ;;  %v1123_v20 = vpop.f32.mrf.mxu3 }
 0x315   :  { %v967_v35 = vpop.f32.mrf.mxu2  ;;  %2039 = vmatmul.msk.f32.gmra.mxu2 %vm248_vm1, %v1496_v11 }
 0x316   :  { %v968_v50 = vadd.f32 %v967_v35, %v854_v59  ;;  %v1188_v1 = vmul.f32 0.1, %v3053_v27  ;;  %v2088_v59 = vmov 0  }
 0x317   :  { %2055 = vset.pattern.permute.xlu0 %v2088_v59  ;;  %2056 = vset.pattern.permute.xlu1 %v2088_v59 }
 0x318   :  { %v1139_v24 = vadd.f32 %v1117_v4, %v968_v50  ;;  %v1204_v51 = vmax.f32 %v3053_v27, %v1188_v1  ;;  %2057 = vset.pattern.permute.xlu2 %v2088_v59 }
 0x31a   :  { %v1155_v6 = vadd.f32 %v1139_v24, %v2770_v39  ;;  %2005 = vmatmul.msk.f32.gmra.mxu0 %vm248_vm1, %v1204_v51  ;;  %v1488_v15 = vrot.slane %v1204_v51, 3  ;;  %v1220_v38 = vrot.slane %v1204_v51, 5 }
 0x31c   :  { %v3067_v45 = vadd.f32 %v2877_v53, %v1155_v6  ;;  %v1495_v44 = vsel %vm491_vm3, %v1487_v33, %v1488_v15  ;;  %v3073_v5 = vsel %vm222_vm2, %v1219_v19, %v1220_v38  ;;  %v1676_v33 = vld [vmem:[%s3279_s5] sm:$0xff] }
 0x31d   :  { %v970_v48 = vpop.f32.mrf.mxu2  ;;  %2040 = vmatmul.msk.f32.gmra.mxu2 %vm248_vm1, %v1495_v44  ;;  %1694 = vperm.xlu0 %2055, %v1676_v33  }
 0x31e   :  { %v971_v39 = vadd.f32 %v970_v48, %v857_v41  ;;  %v1189_v26 = vmul.f32 0.1, %v3067_v45  ;;  %v1678_v48 = vld [vmem:[%s3279_s5 + $0x10] sm:$0xff] }
 0x31f   :  { %1704 = vperm.xlu1 %2056, %v1678_v48  }
 0x320   :  { %v1140_v12 = vadd.f32 %v1120_v34, %v971_v39  ;;  %v1205_v30 = vmax.f32 %v3067_v45, %v1189_v26  ;;  %v1679_v39 = vld [vmem:[%s3279_s5 + $0x18] sm:$0xff]  ;;  %v1684_v26 = vld [vmem:[%s3279_s5 + $0x40] sm:$0xff] }
 0x322   :  { %v1156_v13 = vadd.f32 %v1140_v12, %v2783_v9  ;;  %2006 = vmatmul.msk.f32.gmra.mxu0 %vm248_vm1, %v1205_v30  ;;  %v1489_v16 = vrot.slane %v1205_v30, 3  ;;  %v1221_v47 = vrot.slane %v1205_v30, 5  ;;  %v1691_v12 = vld [vmem:[%s3279_s5 + $0x78] sm:$0xff] }
 0x324   :  { %v3081_v2 = vadd.f32 %v2877_v53, %v1156_v13  ;;  %v1494_v21 = vsel %vm491_vm3, %v1488_v15, %v1489_v16  ;;  %v3087_v23 = vsel %vm222_vm2, %v1220_v38, %v1221_v47 }
 0x325   :  { %v973_v0 = vpop.f32.mrf.mxu2  ;;  %2041 = vmatmul.msk.f32.gmra.mxu2 %vm248_vm1, %v1494_v21 }
 0x326   :  { %v974_v10 = vadd.f32 %v973_v0, %v860_v43  ;;  %v1190_v9 = vmul.f32 0.1, %v3081_v2 }
 0x327   :  { %1709 = vperm.xlu1 %2056, %v1679_v39  }
 0x328   :  { %v1141_v19 = vadd.f32 %v1123_v20, %v974_v10  ;;  %v1206_v4 = vmax.f32 %v3081_v2, %v1190_v9 }
 0x32a   :  { %v1157_v11 = vadd.f32 %v1141_v19, %v2796_v57  ;;  %2007 = vmatmul.msk.f32.gmra.mxu0 %vm248_vm1, %v1206_v4  ;;  %v1490_v35 = vrot.slane %v1206_v4, 3  ;;  %v1222_v50 = vrot.slane %v1206_v4, 5  ;;  %v1677_v57 = vld [vmem:[%s3279_s5 + $0x8] sm:$0xff] }
 0x32b   :  { %1699 = vperm.xlu0 %2055, %v1677_v57  }
 0x32c   :  { %v3098_v1 = vadd.f32 %v2877_v53, %v1157_v11  ;;  %v1493_v24 = vsel %vm491_vm3, %v1489_v16, %v1490_v35  ;;  %v1225_v51 = vsel %vm222_vm2, %v1221_v47, %v1222_v50 }
 0x32d   :  { %2042 = vmatmul.msk.f32.gmra.mxu2 %vm248_vm1, %v1493_v24 }
 0x32e   :  { %v1191_v6 = vmul.f32 0.1, %v3098_v1 }
 0x32f   :  { %1744 = vperm.xlu1 %2056, %v1686_v22  }
 0x330   :  { %v1207_v15 = vmax.f32 %v3098_v1, %v1191_v6 }
 0x332   :  { %v1223_v38 = vrot.slane %v1207_v15, 5  ;;  %2008 = vmatmul.msk.f32.gmra.mxu0 %vm248_vm1, %v1207_v15  ;;  %v1491_v53 = vrot.slane %v1207_v15, 3 }
 0x333   :  { %1739 = vperm.xlu0 %2055, %v1685_v42  }
 0x334   :  { %v1239_v41 = vsel %vm222_vm2, %v1223_v38, %v1208_v17  ;;  %v1492_v44 = vsel %vm491_vm3, %v1490_v35, %v1491_v53  ;;  %v1224_v34 = vsel %vm222_vm2, %v1222_v50, %v1223_v38  ;;  %v1507_v17 = vsel %vm491_vm3, %v1491_v53, %v1476_v36  ;;  %v1681_v36 = vld [vmem:[%s3279_s5 + $0x28] sm:$0xff] }
 0x335   :  { %2009 = vmatmul.msk.f32.vlgmr.msra.gmra.mxu1 %vm248_vm1, %v1239_v41  ;;  %2043 = vmatmul.msk.f32.gmra.mxu2 %vm248_vm1, %v1492_v44 }
 0x337   :  { %1719 = vperm.xlu1 %2056, %v1681_v36  }
 0x33d   :  { %2010 = vmatmul.msk.f32.gmra.mxu1 %vm248_vm1, %v2913_v40  ;;  %2044 = vmatmul.msk.f32.gmra.mxu2 %vm248_vm1, %v1507_v17  ;;  %v1688_v40 = vld [vmem:[%s3279_s5 + $0x60] sm:$0xff] }
 0x33e   :  { %1754 = vperm.xlu0 %2055, %v1688_v40  }
 0x345   :  { %2011 = vmatmul.msk.f32.gmra.mxu1 %vm248_vm1, %v2927_v31  ;;  %v1680_v31 = vld [vmem:[%s3279_s5 + $0x20] sm:$0xff] }
 0x346   :  { %1714 = vperm.xlu2 %2057, %v1680_v31  }
 0x348   :  { %v1578_v30 = vpop.f32.mrf.mxu2 }
 0x34d   :  { %2012 = vmatmul.msk.f32.gmra.mxu1 %vm248_vm1, %v2941_v60  ;;  %v1682_v60 = vld [vmem:[%s3279_s5 + $0x30] sm:$0xff] }
 0x34e   :  { %1724 = vperm.xlu0 %2055, %v1682_v60   ;;  %1734 = vperm.xlu2 %2057, %v1684_v26  }
 0x350   :  { %v1581_v13 = vpop.f32.mrf.mxu2 }
 0x355   :  { %2013 = vmatmul.msk.f32.gmra.mxu1 %vm248_vm1, %v2958_v8  ;;  %v1687_v8 = vld [vmem:[%s3279_s5 + $0x58] sm:$0xff] }
 0x356   :  { %1749 = vperm.xlu2 %2057, %v1687_v8   ;;  %1769 = vperm.xlu0 %2055, %v1691_v12  }
 0x358   :  { %v1584_v47 = vpop.f32.mrf.mxu2 }
 0x35d   :  { %2014 = vmatmul.msk.f32.gmra.mxu1 %vm248_vm1, %v2972_v52  ;;  %v1689_v52 = vld [vmem:[%s3279_s5 + $0x68] sm:$0xff] }
 0x35e   :  { %1759 = vperm.xlu2 %2057, %v1689_v52  }
 0x360   :  { %v1587_v43 = vpop.f32.mrf.mxu2 }
 0x365   :  { %2015 = vmatmul.msk.f32.gmra.mxu1 %vm248_vm1, %v2986_v7  ;;  %v1683_v7 = vld [vmem:[%s3279_s5 + $0x38] sm:$0xff] }
 0x366   :  { %1729 = vperm.xlu2 %2057, %v1683_v7  }
 0x368   :  { %v1590_v33 = vpop.f32.mrf.mxu2 }
 0x36d   :  { %2016 = vmatmul.msk.f32.gmra.mxu1 %vm248_vm1, %v3000_v56  ;;  %v1690_v56 = vld [vmem:[%s3279_s5 + $0x70] sm:$0xff] }
 0x36e   :  { %1764 = vperm.xlu1 %2056, %v1690_v56  }
 0x375   :  { %2017 = vmatmul.msk.f32.gmra.mxu1 %vm248_vm1, %v3017_v28  ;;  %v1315_v28 = vpop.f32.mrf.mxu0 }
 0x37d   :  { %2018 = vmatmul.msk.f32.gmra.mxu1 %vm248_vm1, %v3031_v49  ;;  %v1318_v49 = vpop.f32.mrf.mxu0 }
 0x385   :  { %2019 = vmatmul.msk.f32.gmra.mxu1 %vm248_vm1, %v3045_v54  ;;  %v1321_v16 = vpop.f32.mrf.mxu0 }
 0x38d   :  { %2020 = vmatmul.msk.f32.gmra.mxu1 %vm248_vm1, %v3059_v3  ;;  %v1324_v54 = vpop.f32.mrf.mxu0 }
 0x38f   :  { %v1695_v10 = vpop.permute.xlu0 %1694 }
 0x395   :  { %2021 = vmatmul.msk.f32.gmra.mxu1 %vm248_vm1, %v3073_v5  ;;  %v3200_v5 = vld [vmem:[%s3278_s4 + $0x2] ss:$0 sm:$0xff]  ;;  %v1327_v20 = vpop.f32.mrf.mxu0  ;;  %s2089_s4 = smov [#allocation2]  }
 0x396   :  { %s1842_s8 = sshll.u32 %s2089_s4, 4  ;;  %s1843_s8 = int_to_ptr.vmem [resolvable:$true] %s1842_s8 }
 0x39d   :  { %2022 = vmatmul.msk.f32.gmra.mxu1 %vm248_vm1, %v3087_v23  ;;  %v1700_v35 = vpop.permute.xlu0 %1699  ;;  %v1330_v41 = vpop.f32.mrf.mxu0 }
 0x3a0   :  { %v1715_v17 = vpop.permute.xlu2 %1714 }
 0x3a5   :  { %2023 = vmatmul.msk.f32.gmra.mxu1 %vm248_vm1, %v1225_v51  ;;  %v1333_v8 = vpop.f32.mrf.mxu0 }
 0x3a8   :  { %v3212_v56 = vpop.permute.xlu2 %1734 }
 0x3ad   :  { %2024 = vmatmul.msk.f32.gmra.mxu1 %vm248_vm1, %v1224_v34  ;;  %v1593_v34 = vpop.f32.mrf.mxu2 }
 0x3b2   :  { %v1428_v21 = vpop.f32.mrf.mxu1 }
 0x3b3   :  { %v1429_v3 = vadd.f32 %v1428_v21, %v1315_v28  ;;  %v1336_v21 = vpop.f32.mrf.mxu0 }
 0x3b5   :  { %v1626_v0 = vadd.f32 %v1578_v30, %v1429_v3  ;;  %v1596_v52 = vpop.f32.mrf.mxu2  ;;  %v3214_v30 = vpop.permute.xlu0 %1739 }
 0x3b7   :  { %v1642_v9 = vadd.f32 %v1626_v0, %v2881_v14  ;;  %v1705_v14 = vpop.permute.xlu1 %1704 }
 0x3b9   :  { %v1660_v19 = vadd.f32 %v3200_v5, %v1642_v9  ;;  %v3221_v9 = vpop.permute.xlu2 %1749 }
 0x3ba   :  { %v1431_v23 = vpop.f32.mrf.mxu1 }
 0x3bb   :  { %v1432_v59 = vadd.f32 %v1431_v23, %v1318_v49  ;;  %v1772_v50 = vmul.f32 %v1695_v10, %v1660_v19 }
 0x3bd   :  { %v1627_v4 = vadd.f32 %v1581_v13, %v1432_v59  ;;  %v1788_v15 = vsel %vm248_vm1, %v1772_v50, 0.0  ;;  %v1599_v10 = vpop.f32.mrf.mxu2  ;;  %v3224_v19 = vpop.permute.xlu0 %1754 }
 0x3bf   :  { %v1643_v11 = vadd.f32 %v1627_v4, %v2891_v63  ;;  %v1710_v36 = vpop.permute.xlu1 %1709 }
 0x3c1   :  { %v1661_v24 = vadd.f32 %v3200_v5, %v1643_v11 }
 0x3c2   :  { %v1434_v51 = vpop.f32.mrf.mxu1 }
 0x3c3   :  { %v1773_v6 = vmul.f32 %v1700_v35, %v1661_v24  ;;  %v1435_v57 = vadd.f32 %v1434_v51, %v1321_v16  ;;  %v1339_v24 = vpop.f32.mrf.mxu0 }
 0x3c5   :  { %v1789_v38 = vsel %vm248_vm1, %v1773_v6, 0.0  ;;  %v1628_v53 = vadd.f32 %v1584_v47, %v1435_v57  ;;  %v1602_v6 = vpop.f32.mrf.mxu2 }
 0x3c6   :  { %v1790_v44 = vadd.f32 %v1789_v38, %v1788_v15  ;;  %v3229_v15 = vpop.permute.xlu2 %1759 }
 0x3c7   :  { %v1644_v48 = vadd.f32 %v1628_v53, %v2903_v55  ;;  %v3217_v47 = vpop.permute.xlu1 %1744  ;;  %v1725_v53 = vpop.permute.xlu0 %1724 }
 0x3c9   :  { %v1662_v63 = vadd.f32 %v3200_v5, %v1644_v48 }
 0x3ca   :  { %v1437_v39 = vpop.f32.mrf.mxu1 }
 0x3cb   :  { %v1774_v22 = vmul.f32 %v1705_v14, %v1662_v63  ;;  %v1438_v42 = vadd.f32 %v1437_v39, %v1324_v54  ;;  %v1342_v63 = vpop.f32.mrf.mxu0 }
 0x3cd   :  { %v1791_v40 = vsel %vm248_vm1, %v1774_v22, 0.0  ;;  %v1629_v31 = vadd.f32 %v1587_v43, %v1438_v42  ;;  %v1605_v42 = vpop.f32.mrf.mxu2 }
 0x3ce   :  { %v1792_v60 = vadd.f32 %v1791_v40, %v1790_v44 }
 0x3cf   :  { %v1645_v26 = vadd.f32 %v1629_v31, %v2921_v62  ;;  %v1720_v4 = vpop.permute.xlu1 %1719 }
 0x3d1   :  { %v1663_v7 = vadd.f32 %v3200_v5, %v1645_v26 }
 0x3d2   :  { %v1440_v12 = vpop.f32.mrf.mxu1 }
 0x3d3   :  { %v1775_v55 = vmul.f32 %v1710_v36, %v1663_v7  ;;  %v1441_v28 = vadd.f32 %v1440_v12, %v1327_v20  ;;  %v1730_v36 = vpop.permute.xlu2 %1729 }
 0x3d5   :  { %v1793_v49 = vsel %vm248_vm1, %v1775_v55, 0.0  ;;  %v1630_v13 = vadd.f32 %v1590_v33, %v1441_v28 }
 0x3d6   :  { %v1794_v16 = vadd.f32 %v1793_v49, %v1792_v60 }
 0x3d7   :  { %v1646_v54 = vadd.f32 %v1630_v13, %v2935_v46 }
 0x3d9   :  { %v1664_v62 = vadd.f32 %v3200_v5, %v1646_v54 }
 0x3da   :  { %v1443_v43 = vpop.f32.mrf.mxu1 }
 0x3db   :  { %v1444_v3 = vadd.f32 %v1443_v43, %v1330_v41  ;;  %v1776_v0 = vmul.f32 %v1715_v17, %v1664_v62 }
 0x3dd   :  { %v1631_v23 = vadd.f32 %v1593_v34, %v1444_v3  ;;  %v1795_v59 = vsel %vm248_vm1, %v1776_v0, 0.0 }
 0x3de   :  { %v1796_v20 = vadd.f32 %v1795_v59, %v1794_v16 }
 0x3df   :  { %v1647_v33 = vadd.f32 %v1631_v23, %v2949_v58 }
 0x3e1   :  { %v1665_v46 = vadd.f32 %v3200_v5, %v1647_v33 }
 0x3e2   :  { %v1446_v11 = vpop.f32.mrf.mxu1 }
 0x3e3   :  { %v1777_v35 = vmul.f32 %v1720_v4, %v1665_v46  ;;  %v1447_v50 = vadd.f32 %v1446_v11, %v1333_v8  ;;  %v1345_v8 = vpop.f32.mrf.mxu0 }
 0x3e5   :  { %v1797_v51 = vsel %vm248_vm1, %v1777_v35, 0.0  ;;  %v1632_v14 = vadd.f32 %v1596_v52, %v1447_v50  ;;  %v1608_v52 = vpop.f32.mrf.mxu2 }
 0x3e6   :  { %v1798_v57 = vadd.f32 %v1797_v51, %v1796_v20 }
 0x3e7   :  { %v1648_v38 = vadd.f32 %v1632_v14, %v2966_v32 }
 0x3e9   :  { %v1666_v41 = vadd.f32 %v3200_v5, %v1648_v38 }
 0x3ea   :  { %v1449_v58 = vpop.f32.mrf.mxu1 }
 0x3eb   :  { %v1778_v44 = vmul.f32 %v1725_v53, %v1666_v41  ;;  %v1450_v34 = vadd.f32 %v1449_v58, %v1336_v21  ;;  %v1348_v12 = vpop.f32.mrf.mxu0 }
 0x3ed   :  { %v1799_v48 = vsel %vm248_vm1, %v1778_v44, 0.0  ;;  %v1633_v17 = vadd.f32 %v1599_v10, %v1450_v34  ;;  %v1611_v28 = vpop.f32.mrf.mxu2 }
 0x3ee   :  { %v1800_v39 = vadd.f32 %v1799_v48, %v1798_v57 }
 0x3ef   :  { %v1649_v22 = vadd.f32 %v1633_v17, %v2980_v29 }
 0x3f1   :  { %v1667_v40 = vadd.f32 %v3200_v5, %v1649_v22 }
 0x3f2   :  { %v1452_v31 = vpop.f32.mrf.mxu1 }
 0x3f3   :  { %v1779_v60 = vmul.f32 %v1730_v36, %v1667_v40  ;;  %v1351_v13 = vpop.f32.mrf.mxu0  ;;  %v1453_v62 = vadd.f32 %v1452_v31, %v1339_v24 }
 0x3f5   :  { %v1801_v32 = vsel %vm248_vm1, %v1779_v60, 0.0  ;;  %v1614_v16 = vpop.f32.mrf.mxu2  ;;  %v1634_v23 = vadd.f32 %v1602_v6, %v1453_v62  ;;  %v1770_v62 = vpop.permute.xlu0 %1769 }
 0x3f6   :  { %v3237_v26 = vadd.f32 %v1801_v32, %v1800_v39 }
 0x3f7   :  { %v1650_v35 = vadd.f32 %v1634_v23, %v2994_v37 }
 0x3f9   :  { %v1668_v6 = vadd.f32 %v3200_v5, %v1650_v35 }
 0x3fa   :  { %v1455_v7 = vpop.f32.mrf.mxu1 }
 0x3fb   :  { %v1456_v54 = vadd.f32 %v1455_v7, %v1342_v63  ;;  %v1354_v43 = vpop.f32.mrf.mxu0  ;;  %v1780_v48 = vmul.f32 %v3212_v56, %v1668_v6  ;;  %v1765_v7 = vpop.permute.xlu1 %1764 }
 0x3fd   :  { %v1635_v3 = vadd.f32 %v1605_v42, %v1456_v54  ;;  %v1617_v10 = vpop.f32.mrf.mxu2  ;;  %v1809_v42 = vsel %vm248_vm1, %v1780_v48, 0.0 }
 0x3ff   :  { %v1651_v4 = vadd.f32 %v1635_v3, %v3008_v25 }
 0x401   :  { %v1669_v24 = vadd.f32 %v3200_v5, %v1651_v4 }
 0x402   :  { %v1458_v55 = vpop.f32.mrf.mxu1 }
 0x403   :  { %v1459_v21 = vadd.f32 %v1458_v55, %v1345_v8  ;;  %v1357_v38 = vpop.f32.mrf.mxu0  ;;  %v1781_v44 = vmul.f32 %v3214_v30, %v1669_v24 }
 0x405   :  { %v1636_v59 = vadd.f32 %v1608_v52, %v1459_v21  ;;  %v1620_v25 = vpop.f32.mrf.mxu2  ;;  %v1810_v39 = vsel %vm248_vm1, %v1781_v44, 0.0 }
 0x406   :  { %v1811_v40 = vadd.f32 %v1810_v39, %v1809_v42 }
 0x407   :  { %v1652_v50 = vadd.f32 %v1636_v59, %v3025_v61 }
 0x409   :  { %v1670_v53 = vadd.f32 %v3200_v5, %v1652_v50 }
 0x40a   :  { %v1461_v49 = vpop.f32.mrf.mxu1 }
 0x40b   :  { %v1462_v0 = vadd.f32 %v1461_v49, %v1348_v12 }
 0x40d   :  { %v1637_v46 = vadd.f32 %v1611_v28, %v1462_v0  ;;  %v1623_v8 = vpop.f32.mrf.mxu2  ;;  %v1803_v28 = vrot.slane %v3237_v26, 4 }
 0x40f   :  { %v1653_v14 = vadd.f32 %v1637_v46, %v3039_v18  ;;  %v1782_v18 = vmul.f32 %v3217_v47, %v1670_v53  ;;  %v1360_v47 = vpop.f32.mrf.mxu0  ;;  %v1804_v54 = vadd.f32 %v1803_v28, %v3237_v26 }
 0x411   :  { %v1671_v37 = vadd.f32 %v3200_v5, %v1653_v14 }
 0x412   :  { %v1464_v29 = vpop.f32.mrf.mxu1 }
 0x413   :  { %v1465_v20 = vadd.f32 %v1464_v29, %v1351_v13 }
 0x415   :  { %v1638_v51 = vadd.f32 %v1614_v16, %v1465_v20 }
 0x417   :  { %v1654_v41 = vadd.f32 %v1638_v51, %v3053_v27  ;;  %v1783_v27 = vmul.f32 %v3221_v9, %v1671_v37 }
 0x419   :  { %v1672_v17 = vadd.f32 %v3200_v5, %v1654_v41  ;;  %v1814_v60 = vsel %vm248_vm1, %v1783_v27, 0.0 }
 0x41a   :  { %v1467_v33 = vpop.f32.mrf.mxu1 }
 0x41b   :  { %v1468_v11 = vadd.f32 %v1467_v33, %v1354_v43  ;;  %v1784_v36 = vmul.f32 %v3224_v19, %v1672_v17 }
 0x41d   :  { %v1639_v57 = vadd.f32 %v1617_v10, %v1468_v11  ;;  %v1805_v10 = vrot.slane %v1804_v54, 2 }
 0x41f   :  { %v1655_v61 = vadd.f32 %v1639_v57, %v3067_v45  ;;  %v1812_v45 = vsel %vm248_vm1, %v1782_v18, 0.0  ;;  %v1806_v20 = vadd.f32 %v1805_v10, %v1804_v54 }
 0x420   :  { %v1813_v52 = vadd.f32 %v1812_v45, %v1811_v40 }
 0x421   :  { %v1673_v22 = vadd.f32 %v3200_v5, %v1655_v61 }
 0x422   :  { %v1470_v58 = vpop.f32.mrf.mxu1  ;;  %v1815_v19 = vadd.f32 %v1814_v60, %v1813_v52 }
 0x423   :  { %v1471_v34 = vadd.f32 %v1470_v58, %v1357_v38  ;;  %v1785_v32 = vmul.f32 %v3229_v15, %v1673_v22 }
 0x425   :  { %v1640_v63 = vadd.f32 %v1620_v25, %v1471_v34  ;;  %v1818_v49 = vsel %vm248_vm1, %v1785_v32, 0.0 }
 0x427   :  { %v1656_v30 = vadd.f32 %v1640_v63, %v3081_v2  ;;  %v1816_v2 = vsel %vm248_vm1, %v1784_v36, 0.0 }
 0x428   :  { %v1817_v16 = vadd.f32 %v1816_v2, %v1815_v19 }
 0x429   :  { %v1674_v56 = vadd.f32 %v3200_v5, %v1656_v30 }
 0x42a   :  { %v1473_v31 = vpop.f32.mrf.mxu1  ;;  %v1819_v21 = vadd.f32 %v1818_v49, %v1817_v16 }
 0x42b   :  { %v1474_v9 = vadd.f32 %v1473_v31, %v1360_v47  ;;  %v1786_v12 = vmul.f32 %v1765_v7, %v1674_v56 }
 0x42d   :  { %v1641_v55 = vadd.f32 %v1623_v8, %v1474_v9  ;;  %v1820_v29 = vsel %vm248_vm1, %v1786_v12, 0.0 }
 0x42e   :  { %v1821_v3 = vadd.f32 %v1820_v29, %v1819_v21 }
 0x42f   :  { %v1657_v13 = vadd.f32 %v1641_v55, %v3098_v1  ;;  %v1807_v1 = vrot.slane %v1806_v20, 1 }
 0x431   :  { %v1675_v15 = vadd.f32 %v3200_v5, %v1657_v13  ;;  %v1808_v5 = vadd.f32 %v1807_v1, %v1806_v20 }
 0x433   :  { %v1787_v43 = vmul.f32 %v1770_v62, %v1675_v15 }
 0x435   :  { %v1822_v0 = vsel %vm248_vm1, %v1787_v43, 0.0 }
 0x436   :  { %v1823_v23 = vadd.f32 %v1822_v0, %v1821_v3 }
 0x438   :  { %v1824_v59 = vrot.slane %v1823_v23, 4 }
 0x43a   :  { %v1825_v33 = vadd.f32 %v1824_v59, %v1823_v23 }
 0x43c   :  { %v1826_v4 = vrot.slane %v1825_v33, 2 }
 0x43e   :  { %v1827_v46 = vadd.f32 %v1826_v4, %v1825_v33 }
 0x440   :  { %v1828_v11 = vrot.slane %v1827_v46, 1 }
 0x442   :  { %v1829_v26 = vadd.f32 %v1828_v11, %v1827_v46 }
 0x444   :  { %v1833_v35 = vsel %vm1832_vm4, %v1829_v26, %v1808_v5 }
 0x445   :  { %1836 = vst.msk [vmem:[#allocation2] sm:$0x3] %vm1835_vm5, %v1833_v35 }
 0x446   :  { %1847 = dma.vmem_to_hbm [thread:$0]  %s1843_s8, 32, %s1845_s11, [#allocation3]  }
 0x447   :  { %2086 = dma.done.wait [#allocation3], 32  }
 0x448   :  { %2087 = vsyncadd [#allocation3], 4294967264 }
 0x449   :  { %1852 = vsyncpa [#allocation3], 1 }

</bundles_post_ra>
